<compile_context>
chip_gen: v5e
topology: v5e:2x2
jax: 0.10.0
libtpu: 0.0.40
codegen_flags: <defaults>
</compile_context>

<pallas_src>
import jax
import jax.numpy as jnp
from jax.experimental import pallas as pl
from jax.experimental.pallas import tpu as pltpu


def _make_lstm3_kernel(T, Bp, H):
    """Builds the fused 3-layer wavefront LSTM kernel for static (T, Bp, H)."""

    def kernel(x_ref,          # (T*Bp, D0)   padded, seq-major rows
               wih0_ref,       # (D0, 4H)     layer-0 W_ih^T, cols permuted [i,f,o,g]
               whh0_ref,       # (H, 4H)      layer-0 W_hh^T, permuted
               b0_ref,         # (1, 4H)
               wcat1_ref,      # (2H, 4H)     layer-1 [W_ih^T; W_hh^T], permuted
               b1_ref,         # (1, 4H)
               wcat2_ref,      # (2H, 4H)     layer-2 [W_ih^T; W_hh^T], permuted
               b2_ref,         # (1, 4H)
               out_ref):       # (T*Bp, H)    top-layer hidden states
        # Hoisted layer-0 input projection for all T steps (single fat MXU op,
        # off the serial recurrence path); bias folded in here.
        xp0 = (jnp.dot(x_ref[...], wih0_ref[...],
                       preferred_element_type=jnp.float32) + b0_ref[...])
        whh0 = whh0_ref[...]
        wcat1 = wcat1_ref[...]
        wcat2 = wcat2_ref[...]
        b1 = b1_ref[...]
        b2 = b2_ref[...]

        def cell(gates, c_prev):
            # Gate columns are [i, f, o, g]: one sigmoid over 3H, one tanh over H.
            sig = jax.nn.sigmoid(gates[:, 0:3 * H])      # EUP push #1
            i_g = sig[:, 0 * H:1 * H]
            f_g = sig[:, 1 * H:2 * H]
            o_g = sig[:, 2 * H:3 * H]
            g_g = jnp.tanh(gates[:, 3 * H:4 * H])        # EUP push #2
            c_new = f_g * c_prev + i_g * g_g
            h_new = o_g * jnp.tanh(c_new)                # EUP push #3
            return h_new, c_new

        zeros = jnp.zeros((Bp, H), jnp.float32)
        h0, c0 = zeros, zeros
        h1, c1 = zeros, zeros
        h2, c2 = zeros, zeros

        # Wavefront over diagonals s = t + layer.  Within a diagonal the three
        # active cells are independent -> straight-line unrolled code exposes
        # layer-0 EUP / layer-1 MXU / layer-2 VPU overlap to the scheduler.
        for s in range(T + 2):
            h0_snap = h0        # h_{0, s-1} from the previous diagonal
            h1_snap = h1        # h_{1, s-2} from the previous diagonal

            # Layer 0, step t = s
            if s < T:
                g0 = xp0[s * Bp:(s + 1) * Bp, :] + jnp.dot(
                    h0, whh0, preferred_element_type=jnp.float32)
                h0, c0 = cell(g0, c0)

            # Layer 1, step t = s - 1 : fused input+recurrent matmul
            t1 = s - 1
            if 0 <= t1 < T:
                inp1 = jnp.concatenate([h0_snap, h1], axis=-1)       # (Bp, 2H)
                g1 = jnp.dot(inp1, wcat1,
                             preferred_element_type=jnp.float32) + b1
                h1, c1 = cell(g1, c1)

            # Layer 2, step t = s - 2 : fused input+recurrent matmul
            t2 = s - 2
            if 0 <= t2 < T:
                inp2 = jnp.concatenate([h1_snap, h2], axis=-1)       # (Bp, 2H)
                g2 = jnp.dot(inp2, wcat2,
                             preferred_element_type=jnp.float32) + b2
                h2, c2 = cell(g2, c2)
                # Lane-dense, sublane-aligned row-range store (no masked vst).
                out_ref[t2 * Bp:(t2 + 1) * Bp, :] = h2.astype(out_ref.dtype)

    return kernel


def _lstm_forward_impl(x, kparams):
    """3-layer stacked LSTM forward; returns all top-layer hidden states.

    x: (T, B, input_dim) float32, seq-major (batch_first=False).
    kparams: (wih0_t, whh0_t, b0, wcat1, b1, wcat2, b2) as produced by
             prepare_kernel_params (gate columns permuted to [i,f,o,g]).
    """
    T, B, D0 = x.shape
    wih0_t, whh0_t, b0, wcat1, b1, wcat2, b2 = kparams
    H = whh0_t.shape[0]

    # Pad batch to the f32 sublane count (8) so every per-step slice / store is
    # one full unmasked sublane group.  Padded rows run a harmless LSTM over
    # zero input and are discarded below.
    Bp = max(8, -(-B // 8) * 8)
    x_pad = jnp.pad(x, ((0, 0), (0, Bp - B), (0, 0)))
    x2d = x_pad.reshape(T * Bp, D0)

    weight_args = (wih0_t, whh0_t, b0, wcat1, b1, wcat2, b2)
    args = (x2d,) + weight_args

    # Advisory cost estimate (flops / transcendentals / bytes).
    flops = 2 * T * Bp * 4 * H * (D0 + H + 2 * (2 * H))
    transcendentals = 3 * T * Bp * 5 * H
    bytes_accessed = 4 * (T * Bp * D0 + T * Bp * H
                          + sum(int(a.size) for a in weight_args))
    cost = pl.CostEstimate(flops=flops, transcendentals=transcendentals,
                           bytes_accessed=bytes_accessed)

    # Explicit VMEM budget guard (x + out + xp0 temporary + weights, with
    # headroom); keeps the fully-resident design honest on v7x's smaller VMEM.
    resident_bytes = 4 * (T * Bp * (D0 + H + 4 * H)) \
        + 4 * sum(int(a.size) for a in weight_args)
    vmem_limit = max(8 * 1024 * 1024, 4 * resident_bytes)

    out2d = pl.pallas_call(
        _make_lstm3_kernel(T, Bp, H),
        out_shape=jax.ShapeDtypeStruct((T * Bp, H), jnp.float32),
        in_specs=[pl.BlockSpec(memory_space=pltpu.MemorySpace.VMEM)
                  for _ in args],
        out_specs=pl.BlockSpec(memory_space=pltpu.MemorySpace.VMEM),
        compiler_params=pltpu.CompilerParams(vmem_limit_bytes=vmem_limit),
        cost_estimate=cost,
    )(*args)

    return out2d.reshape(T, Bp, H)[:, :B, :]


lstm_forward = jax.jit(_lstm_forward_impl)


def init_lstm_params(key, input_dim, hidden_dim, num_layers=3):
    """PyTorch-layout init mirroring nn.LSTM: uniform(-1/sqrt(H), 1/sqrt(H)).

    Gate row order is PyTorch's [i, f, g, o]."""
    params = []
    bound = 1.0 / jnp.sqrt(jnp.float32(hidden_dim))
    for layer in range(num_layers):
        d_in = input_dim if layer == 0 else hidden_dim
        key, k1, k2, k3, k4 = jax.random.split(key, 5)
        params.append({
            "w_ih": jax.random.uniform(k1, (4 * hidden_dim, d_in),
                                       jnp.float32, -bound, bound),
            "w_hh": jax.random.uniform(k2, (4 * hidden_dim, hidden_dim),
                                       jnp.float32, -bound, bound),
            "b_ih": jax.random.uniform(k3, (4 * hidden_dim,),
                                       jnp.float32, -bound, bound),
            "b_hh": jax.random.uniform(k4, (4 * hidden_dim,),
                                       jnp.float32, -bound, bound),
        })
    return params


def prepare_kernel_params(params):
    """Pack PyTorch-layout weights for the kernel.

    - transpose W_ih / W_hh to (D_in, 4H) / (H, 4H)
    - fold b_ih + b_hh into one (1, 4H) bias
    - permute gate columns from PyTorch [i, f, g, o] to [i, f, o, g]
      (consistently on W_ih, W_hh and bias) so sigmoid covers a 3H slab
    - for layers >= 1, vertically stack [W_ih^T; W_hh^T] -> (2H, 4H) so the
      per-step projection is a single fused concat(h_below, h_prev) matmul.
    """
    H = params[0]["w_hh"].shape[1]
    perm = jnp.concatenate([jnp.arange(0, 2 * H),          # i, f
                            jnp.arange(3 * H, 4 * H),      # o
                            jnp.arange(2 * H, 3 * H)])     # g
    packed = []
    for layer, p in enumerate(params):
        wih_t = p["w_ih"].T[:, perm]                        # (D_in, 4H)
        whh_t = p["w_hh"].T[:, perm]                        # (H, 4H)
        bias = (p["b_ih"] + p["b_hh"])[perm][None, :]       # (1, 4H)
        if layer == 0:
            packed.extend([wih_t, whh_t, bias])
        else:
            wcat = jnp.concatenate([wih_t, whh_t], axis=0)  # (2H, 4H)
            packed.extend([wcat, bias])
    return tuple(packed)


def _reference_lstm(x, params):
    """Pure-JAX reference (lax.scan) using PyTorch [i,f,g,o] gate order."""
    h_seq = x
    for p in params:
        w_ih_t = p["w_ih"].T
        w_hh_t = p["w_hh"].T
        bias = (p["b_ih"] + p["b_hh"])[None, :]
        H = p["w_hh"].shape[1]
        B = x.shape[1]

        def step(carry, x_t, w_ih_t=w_ih_t, w_hh_t=w_hh_t, bias=bias, H=H):
            h_prev, c_prev = carry
            gates = x_t @ w_ih_t + h_prev @ w_hh_t + bias
            i_g = jax.nn.sigmoid(gates[:, 0 * H:1 * H])
            f_g = jax.nn.sigmoid(gates[:, 1 * H:2 * H])
            g_g = jnp.tanh(gates[:, 2 * H:3 * H])
            o_g = jax.nn.sigmoid(gates[:, 3 * H:4 * H])
            c_new = f_g * c_prev + i_g * g_g
            h_new = o_g * jnp.tanh(c_new)
            return (h_new, c_new), h_new

        init = (jnp.zeros((B, H), jnp.float32),
                jnp.zeros((B, H), jnp.float32))
        _, h_seq = jax.lax.scan(step, init, h_seq)
    return h_seq


if __name__ == "__main__":
    # Module config: LSTM(input_dim, hidden_dim, dropout), 3 layers, seq-major.
    seq_len, batch, input_dim, hidden_dim = 8, 2, 16, 32
    dropout = 0.0  # eval/inference semantics; see TODO(synk) above.

    key = jax.random.PRNGKey(0)
    key, kx = jax.random.split(key)
    x = jax.random.normal(kx, (seq_len, batch, input_dim), jnp.float32)

    params = init_lstm_params(key, input_dim, hidden_dim, num_layers=3)
    kparams = prepare_kernel_params(params)

    out = lstm_forward(x, kparams)
    jax.block_until_ready(out)

    ref = _reference_lstm(x, params)
    assert out.shape == (seq_len, batch, hidden_dim)
    assert jnp.allclose(out, ref, atol=1e-4, rtol=1e-4), "mismatch vs reference"

    print("KERNEL_OK")
</pallas_src>

<mosaic_0001>
module attributes {stable_mosaic.version = 11 : i64} {
  func.func @kernel(%arg0: memref<64x16xf32, #tpu.memory_space<vmem>>, %arg1: memref<16x128xf32, #tpu.memory_space<vmem>>, %arg2: memref<32x128xf32, #tpu.memory_space<vmem>>, %arg3: memref<1x128xf32, #tpu.memory_space<vmem>>, %arg4: memref<64x128xf32, #tpu.memory_space<vmem>>, %arg5: memref<1x128xf32, #tpu.memory_space<vmem>>, %arg6: memref<64x128xf32, #tpu.memory_space<vmem>>, %arg7: memref<1x128xf32, #tpu.memory_space<vmem>>, %arg8: memref<64x32xf32, #tpu.memory_space<vmem>>) attributes {dimension_semantics = [], scalar_prefetch = 0 : i64, scratch_operands = 0 : i64, tpu.core_type = #tpu.core_type<tc>} {
    %c0 = arith.constant 0 : index
    %c0_0 = arith.constant 0 : index
    %0 = vector.load %arg0[%c0, %c0_0] : memref<64x16xf32, #tpu.memory_space<vmem>>, vector<64x16xf32>
    %c0_1 = arith.constant 0 : index
    %c0_2 = arith.constant 0 : index
    %1 = vector.load %arg1[%c0_1, %c0_2] : memref<16x128xf32, #tpu.memory_space<vmem>>, vector<16x128xf32>
    %cst = arith.constant dense<0.000000e+00> : vector<64x128xf32>
    %2 = tpu.matmul %0, %1, %cst {dimension_numbers = #tpu.dot_dimension_numbers<[1], [0], [0], [1], [0, 0, 1, 1], [], []>} : vector<64x16xf32>, vector<16x128xf32>, vector<64x128xf32> -> vector<64x128xf32>
    %c0_3 = arith.constant 0 : index
    %c0_4 = arith.constant 0 : index
    %3 = vector.load %arg3[%c0_3, %c0_4] : memref<1x128xf32, #tpu.memory_space<vmem>>, vector<1x128xf32>
    %4 = vector.broadcast %3 : vector<1x128xf32> to vector<64x128xf32>
    %5 = arith.addf %2, %4 : vector<64x128xf32>
    %c0_5 = arith.constant 0 : index
    %c0_6 = arith.constant 0 : index
    %6 = vector.load %arg2[%c0_5, %c0_6] : memref<32x128xf32, #tpu.memory_space<vmem>>, vector<32x128xf32>
    %c0_7 = arith.constant 0 : index
    %c0_8 = arith.constant 0 : index
    %7 = vector.load %arg4[%c0_7, %c0_8] : memref<64x128xf32, #tpu.memory_space<vmem>>, vector<64x128xf32>
    %c0_9 = arith.constant 0 : index
    %c0_10 = arith.constant 0 : index
    %8 = vector.load %arg6[%c0_9, %c0_10] : memref<64x128xf32, #tpu.memory_space<vmem>>, vector<64x128xf32>
    %c0_11 = arith.constant 0 : index
    %c0_12 = arith.constant 0 : index
    %9 = vector.load %arg5[%c0_11, %c0_12] : memref<1x128xf32, #tpu.memory_space<vmem>>, vector<1x128xf32>
    %c0_13 = arith.constant 0 : index
    %c0_14 = arith.constant 0 : index
    %10 = vector.load %arg7[%c0_13, %c0_14] : memref<1x128xf32, #tpu.memory_space<vmem>>, vector<1x128xf32>
    %cst_15 = arith.constant 0.000000e+00 : f32
    %11 = vector.broadcast %cst_15 : f32 to vector<8x32xf32>
    %12 = vector.extract_strided_slice %5 {offsets = [0, 0], sizes = [8, 128], strides = [1, 1]} : vector<64x128xf32> to vector<8x128xf32>
    %cst_16 = arith.constant dense<0.000000e+00> : vector<8x128xf32>
    %13 = tpu.matmul %11, %6, %cst_16 {dimension_numbers = #tpu.dot_dimension_numbers<[1], [0], [0], [1], [0, 0, 1, 1], [], []>} : vector<8x32xf32>, vector<32x128xf32>, vector<8x128xf32> -> vector<8x128xf32>
    %14 = arith.addf %12, %13 : vector<8x128xf32>
    %15 = vector.extract_strided_slice %14 {offsets = [0, 0], sizes = [8, 96], strides = [1, 1]} : vector<8x128xf32> to vector<8x96xf32>
    %16 = arith.negf %15 : vector<8x96xf32>
    %17 = math.exp %16 : vector<8x96xf32>
    %cst_17 = arith.constant 1.000000e+00 : f32
    %18 = vector.broadcast %cst_17 : f32 to vector<8x96xf32>
    %19 = arith.addf %18, %17 : vector<8x96xf32>
    %20 = arith.divf %18, %19 : vector<8x96xf32>
    %21 = vector.extract_strided_slice %20 {offsets = [0, 0], sizes = [8, 32], strides = [1, 1]} : vector<8x96xf32> to vector<8x32xf32>
    %22 = vector.extract_strided_slice %20 {offsets = [0, 32], sizes = [8, 32], strides = [1, 1]} : vector<8x96xf32> to vector<8x32xf32>
    %23 = vector.extract_strided_slice %20 {offsets = [0, 64], sizes = [8, 32], strides = [1, 1]} : vector<8x96xf32> to vector<8x32xf32>
    %24 = vector.extract_strided_slice %14 {offsets = [0, 96], sizes = [8, 32], strides = [1, 1]} : vector<8x128xf32> to vector<8x32xf32>
    %25 = math.tanh %24 : vector<8x32xf32>
    %26 = arith.mulf %22, %11 : vector<8x32xf32>
    %27 = arith.mulf %21, %25 : vector<8x32xf32>
    %28 = arith.addf %26, %27 : vector<8x32xf32>
    %29 = math.tanh %28 : vector<8x32xf32>
    %30 = arith.mulf %23, %29 : vector<8x32xf32>
    %31 = vector.extract_strided_slice %5 {offsets = [8, 0], sizes = [8, 128], strides = [1, 1]} : vector<64x128xf32> to vector<8x128xf32>
    %cst_18 = arith.constant dense<0.000000e+00> : vector<8x128xf32>
    %32 = tpu.matmul %30, %6, %cst_18 {dimension_numbers = #tpu.dot_dimension_numbers<[1], [0], [0], [1], [0, 0, 1, 1], [], []>} : vector<8x32xf32>, vector<32x128xf32>, vector<8x128xf32> -> vector<8x128xf32>
    %33 = arith.addf %31, %32 : vector<8x128xf32>
    %34 = vector.extract_strided_slice %33 {offsets = [0, 0], sizes = [8, 96], strides = [1, 1]} : vector<8x128xf32> to vector<8x96xf32>
    %35 = arith.negf %34 : vector<8x96xf32>
    %36 = math.exp %35 : vector<8x96xf32>
    %cst_19 = arith.constant 1.000000e+00 : f32
    %37 = vector.broadcast %cst_19 : f32 to vector<8x96xf32>
    %38 = arith.addf %37, %36 : vector<8x96xf32>
    %39 = arith.divf %37, %38 : vector<8x96xf32>
    %40 = vector.extract_strided_slice %39 {offsets = [0, 0], sizes = [8, 32], strides = [1, 1]} : vector<8x96xf32> to vector<8x32xf32>
    %41 = vector.extract_strided_slice %39 {offsets = [0, 32], sizes = [8, 32], strides = [1, 1]} : vector<8x96xf32> to vector<8x32xf32>
    %42 = vector.extract_strided_slice %39 {offsets = [0, 64], sizes = [8, 32], strides = [1, 1]} : vector<8x96xf32> to vector<8x32xf32>
    %43 = vector.extract_strided_slice %33 {offsets = [0, 96], sizes = [8, 32], strides = [1, 1]} : vector<8x128xf32> to vector<8x32xf32>
    %44 = math.tanh %43 : vector<8x32xf32>
    %45 = arith.mulf %41, %28 : vector<8x32xf32>
    %46 = arith.mulf %40, %44 : vector<8x32xf32>
    %47 = arith.addf %45, %46 : vector<8x32xf32>
    %48 = math.tanh %47 : vector<8x32xf32>
    %49 = arith.mulf %42, %48 : vector<8x32xf32>
    %50 = tpu.concatenate %30, %11 in 1 : vector<8x32xf32>, vector<8x32xf32> -> vector<8x64xf32>
    %cst_20 = arith.constant dense<0.000000e+00> : vector<8x128xf32>
    %51 = tpu.matmul %50, %7, %cst_20 {dimension_numbers = #tpu.dot_dimension_numbers<[1], [0], [0], [1], [0, 0, 1, 1], [], []>} : vector<8x64xf32>, vector<64x128xf32>, vector<8x128xf32> -> vector<8x128xf32>
    %52 = vector.broadcast %9 : vector<1x128xf32> to vector<8x128xf32>
    %53 = arith.addf %51, %52 : vector<8x128xf32>
    %54 = vector.extract_strided_slice %53 {offsets = [0, 0], sizes = [8, 96], strides = [1, 1]} : vector<8x128xf32> to vector<8x96xf32>
    %55 = arith.negf %54 : vector<8x96xf32>
    %56 = math.exp %55 : vector<8x96xf32>
    %cst_21 = arith.constant 1.000000e+00 : f32
    %57 = vector.broadcast %cst_21 : f32 to vector<8x96xf32>
    %58 = arith.addf %57, %56 : vector<8x96xf32>
    %59 = arith.divf %57, %58 : vector<8x96xf32>
    %60 = vector.extract_strided_slice %59 {offsets = [0, 0], sizes = [8, 32], strides = [1, 1]} : vector<8x96xf32> to vector<8x32xf32>
    %61 = vector.extract_strided_slice %59 {offsets = [0, 32], sizes = [8, 32], strides = [1, 1]} : vector<8x96xf32> to vector<8x32xf32>
    %62 = vector.extract_strided_slice %59 {offsets = [0, 64], sizes = [8, 32], strides = [1, 1]} : vector<8x96xf32> to vector<8x32xf32>
    %63 = vector.extract_strided_slice %53 {offsets = [0, 96], sizes = [8, 32], strides = [1, 1]} : vector<8x128xf32> to vector<8x32xf32>
    %64 = math.tanh %63 : vector<8x32xf32>
    %65 = arith.mulf %61, %11 : vector<8x32xf32>
    %66 = arith.mulf %60, %64 : vector<8x32xf32>
    %67 = arith.addf %65, %66 : vector<8x32xf32>
    %68 = math.tanh %67 : vector<8x32xf32>
    %69 = arith.mulf %62, %68 : vector<8x32xf32>
    %70 = vector.extract_strided_slice %5 {offsets = [16, 0], sizes = [8, 128], strides = [1, 1]} : vector<64x128xf32> to vector<8x128xf32>
    %cst_22 = arith.constant dense<0.000000e+00> : vector<8x128xf32>
    %71 = tpu.matmul %49, %6, %cst_22 {dimension_numbers = #tpu.dot_dimension_numbers<[1], [0], [0], [1], [0, 0, 1, 1], [], []>} : vector<8x32xf32>, vector<32x128xf32>, vector<8x128xf32> -> vector<8x128xf32>
    %72 = arith.addf %70, %71 : vector<8x128xf32>
    %73 = vector.extract_strided_slice %72 {offsets = [0, 0], sizes = [8, 96], strides = [1, 1]} : vector<8x128xf32> to vector<8x96xf32>
    %74 = arith.negf %73 : vector<8x96xf32>
    %75 = math.exp %74 : vector<8x96xf32>
    %cst_23 = arith.constant 1.000000e+00 : f32
    %76 = vector.broadcast %cst_23 : f32 to vector<8x96xf32>
    %77 = arith.addf %76, %75 : vector<8x96xf32>
    %78 = arith.divf %76, %77 : vector<8x96xf32>
    %79 = vector.extract_strided_slice %78 {offsets = [0, 0], sizes = [8, 32], strides = [1, 1]} : vector<8x96xf32> to vector<8x32xf32>
    %80 = vector.extract_strided_slice %78 {offsets = [0, 32], sizes = [8, 32], strides = [1, 1]} : vector<8x96xf32> to vector<8x32xf32>
    %81 = vector.extract_strided_slice %78 {offsets = [0, 64], sizes = [8, 32], strides = [1, 1]} : vector<8x96xf32> to vector<8x32xf32>
    %82 = vector.extract_strided_slice %72 {offsets = [0, 96], sizes = [8, 32], strides = [1, 1]} : vector<8x128xf32> to vector<8x32xf32>
    %83 = math.tanh %82 : vector<8x32xf32>
    %84 = arith.mulf %80, %47 : vector<8x32xf32>
    %85 = arith.mulf %79, %83 : vector<8x32xf32>
    %86 = arith.addf %84, %85 : vector<8x32xf32>
    %87 = math.tanh %86 : vector<8x32xf32>
    %88 = arith.mulf %81, %87 : vector<8x32xf32>
    %89 = tpu.concatenate %49, %69 in 1 : vector<8x32xf32>, vector<8x32xf32> -> vector<8x64xf32>
    %cst_24 = arith.constant dense<0.000000e+00> : vector<8x128xf32>
    %90 = tpu.matmul %89, %7, %cst_24 {dimension_numbers = #tpu.dot_dimension_numbers<[1], [0], [0], [1], [0, 0, 1, 1], [], []>} : vector<8x64xf32>, vector<64x128xf32>, vector<8x128xf32> -> vector<8x128xf32>
    %91 = vector.broadcast %9 : vector<1x128xf32> to vector<8x128xf32>
    %92 = arith.addf %90, %91 : vector<8x128xf32>
    %93 = vector.extract_strided_slice %92 {offsets = [0, 0], sizes = [8, 96], strides = [1, 1]} : vector<8x128xf32> to vector<8x96xf32>
    %94 = arith.negf %93 : vector<8x96xf32>
    %95 = math.exp %94 : vector<8x96xf32>
    %cst_25 = arith.constant 1.000000e+00 : f32
    %96 = vector.broadcast %cst_25 : f32 to vector<8x96xf32>
    %97 = arith.addf %96, %95 : vector<8x96xf32>
    %98 = arith.divf %96, %97 : vector<8x96xf32>
    %99 = vector.extract_strided_slice %98 {offsets = [0, 0], sizes = [8, 32], strides = [1, 1]} : vector<8x96xf32> to vector<8x32xf32>
    %100 = vector.extract_strided_slice %98 {offsets = [0, 32], sizes = [8, 32], strides = [1, 1]} : vector<8x96xf32> to vector<8x32xf32>
    %101 = vector.extract_strided_slice %98 {offsets = [0, 64], sizes = [8, 32], strides = [1, 1]} : vector<8x96xf32> to vector<8x32xf32>
    %102 = vector.extract_strided_slice %92 {offsets = [0, 96], sizes = [8, 32], strides = [1, 1]} : vector<8x128xf32> to vector<8x32xf32>
    %103 = math.tanh %102 : vector<8x32xf32>
    %104 = arith.mulf %100, %67 : vector<8x32xf32>
    %105 = arith.mulf %99, %103 : vector<8x32xf32>
    %106 = arith.addf %104, %105 : vector<8x32xf32>
    %107 = math.tanh %106 : vector<8x32xf32>
    %108 = arith.mulf %101, %107 : vector<8x32xf32>
    %109 = tpu.concatenate %69, %11 in 1 : vector<8x32xf32>, vector<8x32xf32> -> vector<8x64xf32>
    %cst_26 = arith.constant dense<0.000000e+00> : vector<8x128xf32>
    %110 = tpu.matmul %109, %8, %cst_26 {dimension_numbers = #tpu.dot_dimension_numbers<[1], [0], [0], [1], [0, 0, 1, 1], [], []>} : vector<8x64xf32>, vector<64x128xf32>, vector<8x128xf32> -> vector<8x128xf32>
    %111 = vector.broadcast %10 : vector<1x128xf32> to vector<8x128xf32>
    %112 = arith.addf %110, %111 : vector<8x128xf32>
    %113 = vector.extract_strided_slice %112 {offsets = [0, 0], sizes = [8, 96], strides = [1, 1]} : vector<8x128xf32> to vector<8x96xf32>
    %114 = arith.negf %113 : vector<8x96xf32>
    %115 = math.exp %114 : vector<8x96xf32>
    %cst_27 = arith.constant 1.000000e+00 : f32
    %116 = vector.broadcast %cst_27 : f32 to vector<8x96xf32>
    %117 = arith.addf %116, %115 : vector<8x96xf32>
    %118 = arith.divf %116, %117 : vector<8x96xf32>
    %119 = vector.extract_strided_slice %118 {offsets = [0, 0], sizes = [8, 32], strides = [1, 1]} : vector<8x96xf32> to vector<8x32xf32>
    %120 = vector.extract_strided_slice %118 {offsets = [0, 32], sizes = [8, 32], strides = [1, 1]} : vector<8x96xf32> to vector<8x32xf32>
    %121 = vector.extract_strided_slice %118 {offsets = [0, 64], sizes = [8, 32], strides = [1, 1]} : vector<8x96xf32> to vector<8x32xf32>
    %122 = vector.extract_strided_slice %112 {offsets = [0, 96], sizes = [8, 32], strides = [1, 1]} : vector<8x128xf32> to vector<8x32xf32>
    %123 = math.tanh %122 : vector<8x32xf32>
    %124 = arith.mulf %120, %11 : vector<8x32xf32>
    %125 = arith.mulf %119, %123 : vector<8x32xf32>
    %126 = arith.addf %124, %125 : vector<8x32xf32>
    %127 = math.tanh %126 : vector<8x32xf32>
    %128 = arith.mulf %121, %127 : vector<8x32xf32>
    %c0_28 = arith.constant 0 : index
    %c0_29 = arith.constant 0 : index
    %129 = vector.load %arg8[%c0_28, %c0_29] : memref<64x32xf32, #tpu.memory_space<vmem>>, vector<8x32xf32>
    tpu.vector_store %arg8[%c0_28, %c0_29], %128 {strides = array<i32>} : memref<64x32xf32, #tpu.memory_space<vmem>>, vector<8x32xf32>,
    %130 = vector.extract_strided_slice %5 {offsets = [24, 0], sizes = [8, 128], strides = [1, 1]} : vector<64x128xf32> to vector<8x128xf32>
    %cst_30 = arith.constant dense<0.000000e+00> : vector<8x128xf32>
    %131 = tpu.matmul %88, %6, %cst_30 {dimension_numbers = #tpu.dot_dimension_numbers<[1], [0], [0], [1], [0, 0, 1, 1], [], []>} : vector<8x32xf32>, vector<32x128xf32>, vector<8x128xf32> -> vector<8x128xf32>
    %132 = arith.addf %130, %131 : vector<8x128xf32>
    %133 = vector.extract_strided_slice %132 {offsets = [0, 0], sizes = [8, 96], strides = [1, 1]} : vector<8x128xf32> to vector<8x96xf32>
    %134 = arith.negf %133 : vector<8x96xf32>
    %135 = math.exp %134 : vector<8x96xf32>
    %cst_31 = arith.constant 1.000000e+00 : f32
    %136 = vector.broadcast %cst_31 : f32 to vector<8x96xf32>
    %137 = arith.addf %136, %135 : vector<8x96xf32>
    %138 = arith.divf %136, %137 : vector<8x96xf32>
    %139 = vector.extract_strided_slice %138 {offsets = [0, 0], sizes = [8, 32], strides = [1, 1]} : vector<8x96xf32> to vector<8x32xf32>
    %140 = vector.extract_strided_slice %138 {offsets = [0, 32], sizes = [8, 32], strides = [1, 1]} : vector<8x96xf32> to vector<8x32xf32>
    %141 = vector.extract_strided_slice %138 {offsets = [0, 64], sizes = [8, 32], strides = [1, 1]} : vector<8x96xf32> to vector<8x32xf32>
    %142 = vector.extract_strided_slice %132 {offsets = [0, 96], sizes = [8, 32], strides = [1, 1]} : vector<8x128xf32> to vector<8x32xf32>
    %143 = math.tanh %142 : vector<8x32xf32>
    %144 = arith.mulf %140, %86 : vector<8x32xf32>
    %145 = arith.mulf %139, %143 : vector<8x32xf32>
    %146 = arith.addf %144, %145 : vector<8x32xf32>
    %147 = math.tanh %146 : vector<8x32xf32>
    %148 = arith.mulf %141, %147 : vector<8x32xf32>
    %149 = tpu.concatenate %88, %108 in 1 : vector<8x32xf32>, vector<8x32xf32> -> vector<8x64xf32>
    %cst_32 = arith.constant dense<0.000000e+00> : vector<8x128xf32>
    %150 = tpu.matmul %149, %7, %cst_32 {dimension_numbers = #tpu.dot_dimension_numbers<[1], [0], [0], [1], [0, 0, 1, 1], [], []>} : vector<8x64xf32>, vector<64x128xf32>, vector<8x128xf32> -> vector<8x128xf32>
    %151 = vector.broadcast %9 : vector<1x128xf32> to vector<8x128xf32>
    %152 = arith.addf %150, %151 : vector<8x128xf32>
    %153 = vector.extract_strided_slice %152 {offsets = [0, 0], sizes = [8, 96], strides = [1, 1]} : vector<8x128xf32> to vector<8x96xf32>
    %154 = arith.negf %153 : vector<8x96xf32>
    %155 = math.exp %154 : vector<8x96xf32>
    %cst_33 = arith.constant 1.000000e+00 : f32
    %156 = vector.broadcast %cst_33 : f32 to vector<8x96xf32>
    %157 = arith.addf %156, %155 : vector<8x96xf32>
    %158 = arith.divf %156, %157 : vector<8x96xf32>
    %159 = vector.extract_strided_slice %158 {offsets = [0, 0], sizes = [8, 32], strides = [1, 1]} : vector<8x96xf32> to vector<8x32xf32>
    %160 = vector.extract_strided_slice %158 {offsets = [0, 32], sizes = [8, 32], strides = [1, 1]} : vector<8x96xf32> to vector<8x32xf32>
    %161 = vector.extract_strided_slice %158 {offsets = [0, 64], sizes = [8, 32], strides = [1, 1]} : vector<8x96xf32> to vector<8x32xf32>
    %162 = vector.extract_strided_slice %152 {offsets = [0, 96], sizes = [8, 32], strides = [1, 1]} : vector<8x128xf32> to vector<8x32xf32>
    %163 = math.tanh %162 : vector<8x32xf32>
    %164 = arith.mulf %160, %106 : vector<8x32xf32>
    %165 = arith.mulf %159, %163 : vector<8x32xf32>
    %166 = arith.addf %164, %165 : vector<8x32xf32>
    %167 = math.tanh %166 : vector<8x32xf32>
    %168 = arith.mulf %161, %167 : vector<8x32xf32>
    %169 = tpu.concatenate %108, %128 in 1 : vector<8x32xf32>, vector<8x32xf32> -> vector<8x64xf32>
    %cst_34 = arith.constant dense<0.000000e+00> : vector<8x128xf32>
    %170 = tpu.matmul %169, %8, %cst_34 {dimension_numbers = #tpu.dot_dimension_numbers<[1], [0], [0], [1], [0, 0, 1, 1], [], []>} : vector<8x64xf32>, vector<64x128xf32>, vector<8x128xf32> -> vector<8x128xf32>
    %171 = vector.broadcast %10 : vector<1x128xf32> to vector<8x128xf32>
    %172 = arith.addf %170, %171 : vector<8x128xf32>
    %173 = vector.extract_strided_slice %172 {offsets = [0, 0], sizes = [8, 96], strides = [1, 1]} : vector<8x128xf32> to vector<8x96xf32>
    %174 = arith.negf %173 : vector<8x96xf32>
    %175 = math.exp %174 : vector<8x96xf32>
    %cst_35 = arith.constant 1.000000e+00 : f32
    %176 = vector.broadcast %cst_35 : f32 to vector<8x96xf32>
    %177 = arith.addf %176, %175 : vector<8x96xf32>
    %178 = arith.divf %176, %177 : vector<8x96xf32>
    %179 = vector.extract_strided_slice %178 {offsets = [0, 0], sizes = [8, 32], strides = [1, 1]} : vector<8x96xf32> to vector<8x32xf32>
    %180 = vector.extract_strided_slice %178 {offsets = [0, 32], sizes = [8, 32], strides = [1, 1]} : vector<8x96xf32> to vector<8x32xf32>
    %181 = vector.extract_strided_slice %178 {offsets = [0, 64], sizes = [8, 32], strides = [1, 1]} : vector<8x96xf32> to vector<8x32xf32>
    %182 = vector.extract_strided_slice %172 {offsets = [0, 96], sizes = [8, 32], strides = [1, 1]} : vector<8x128xf32> to vector<8x32xf32>
    %183 = math.tanh %182 : vector<8x32xf32>
    %184 = arith.mulf %180, %126 : vector<8x32xf32>
    %185 = arith.mulf %179, %183 : vector<8x32xf32>
    %186 = arith.addf %184, %185 : vector<8x32xf32>
    %187 = math.tanh %186 : vector<8x32xf32>
    %188 = arith.mulf %181, %187 : vector<8x32xf32>
    %c8 = arith.constant 8 : index
    %c0_36 = arith.constant 0 : index
    %189 = vector.load %arg8[%c8, %c0_36] : memref<64x32xf32, #tpu.memory_space<vmem>>, vector<8x32xf32>
    tpu.vector_store %arg8[%c8, %c0_36], %188 {strides = array<i32>} : memref<64x32xf32, #tpu.memory_space<vmem>>, vector<8x32xf32>,
    %190 = vector.extract_strided_slice %5 {offsets = [32, 0], sizes = [8, 128], strides = [1, 1]} : vector<64x128xf32> to vector<8x128xf32>
    %cst_37 = arith.constant dense<0.000000e+00> : vector<8x128xf32>
    %191 = tpu.matmul %148, %6, %cst_37 {dimension_numbers = #tpu.dot_dimension_numbers<[1], [0], [0], [1], [0, 0, 1, 1], [], []>} : vector<8x32xf32>, vector<32x128xf32>, vector<8x128xf32> -> vector<8x128xf32>
    %192 = arith.addf %190, %191 : vector<8x128xf32>
    %193 = vector.extract_strided_slice %192 {offsets = [0, 0], sizes = [8, 96], strides = [1, 1]} : vector<8x128xf32> to vector<8x96xf32>
    %194 = arith.negf %193 : vector<8x96xf32>
    %195 = math.exp %194 : vector<8x96xf32>
    %cst_38 = arith.constant 1.000000e+00 : f32
    %196 = vector.broadcast %cst_38 : f32 to vector<8x96xf32>
    %197 = arith.addf %196, %195 : vector<8x96xf32>
    %198 = arith.divf %196, %197 : vector<8x96xf32>
    %199 = vector.extract_strided_slice %198 {offsets = [0, 0], sizes = [8, 32], strides = [1, 1]} : vector<8x96xf32> to vector<8x32xf32>
    %200 = vector.extract_strided_slice %198 {offsets = [0, 32], sizes = [8, 32], strides = [1, 1]} : vector<8x96xf32> to vector<8x32xf32>
    %201 = vector.extract_strided_slice %198 {offsets = [0, 64], sizes = [8, 32], strides = [1, 1]} : vector<8x96xf32> to vector<8x32xf32>
    %202 = vector.extract_strided_slice %192 {offsets = [0, 96], sizes = [8, 32], strides = [1, 1]} : vector<8x128xf32> to vector<8x32xf32>
    %203 = math.tanh %202 : vector<8x32xf32>
    %204 = arith.mulf %200, %146 : vector<8x32xf32>
    %205 = arith.mulf %199, %203 : vector<8x32xf32>
    %206 = arith.addf %204, %205 : vector<8x32xf32>
    %207 = math.tanh %206 : vector<8x32xf32>
    %208 = arith.mulf %201, %207 : vector<8x32xf32>
    %209 = tpu.concatenate %148, %168 in 1 : vector<8x32xf32>, vector<8x32xf32> -> vector<8x64xf32>
    %cst_39 = arith.constant dense<0.000000e+00> : vector<8x128xf32>
    %210 = tpu.matmul %209, %7, %cst_39 {dimension_numbers = #tpu.dot_dimension_numbers<[1], [0], [0], [1], [0, 0, 1, 1], [], []>} : vector<8x64xf32>, vector<64x128xf32>, vector<8x128xf32> -> vector<8x128xf32>
    %211 = vector.broadcast %9 : vector<1x128xf32> to vector<8x128xf32>
    %212 = arith.addf %210, %211 : vector<8x128xf32>
    %213 = vector.extract_strided_slice %212 {offsets = [0, 0], sizes = [8, 96], strides = [1, 1]} : vector<8x128xf32> to vector<8x96xf32>
    %214 = arith.negf %213 : vector<8x96xf32>
    %215 = math.exp %214 : vector<8x96xf32>
    %cst_40 = arith.constant 1.000000e+00 : f32
    %216 = vector.broadcast %cst_40 : f32 to vector<8x96xf32>
    %217 = arith.addf %216, %215 : vector<8x96xf32>
    %218 = arith.divf %216, %217 : vector<8x96xf32>
    %219 = vector.extract_strided_slice %218 {offsets = [0, 0], sizes = [8, 32], strides = [1, 1]} : vector<8x96xf32> to vector<8x32xf32>
    %220 = vector.extract_strided_slice %218 {offsets = [0, 32], sizes = [8, 32], strides = [1, 1]} : vector<8x96xf32> to vector<8x32xf32>
    %221 = vector.extract_strided_slice %218 {offsets = [0, 64], sizes = [8, 32], strides = [1, 1]} : vector<8x96xf32> to vector<8x32xf32>
    %222 = vector.extract_strided_slice %212 {offsets = [0, 96], sizes = [8, 32], strides = [1, 1]} : vector<8x128xf32> to vector<8x32xf32>
    %223 = math.tanh %222 : vector<8x32xf32>
    %224 = arith.mulf %220, %166 : vector<8x32xf32>
    %225 = arith.mulf %219, %223 : vector<8x32xf32>
    %226 = arith.addf %224, %225 : vector<8x32xf32>
    %227 = math.tanh %226 : vector<8x32xf32>
    %228 = arith.mulf %221, %227 : vector<8x32xf32>
    %229 = tpu.concatenate %168, %188 in 1 : vector<8x32xf32>, vector<8x32xf32> -> vector<8x64xf32>
    %cst_41 = arith.constant dense<0.000000e+00> : vector<8x128xf32>
    %230 = tpu.matmul %229, %8, %cst_41 {dimension_numbers = #tpu.dot_dimension_numbers<[1], [0], [0], [1], [0, 0, 1, 1], [], []>} : vector<8x64xf32>, vector<64x128xf32>, vector<8x128xf32> -> vector<8x128xf32>
    %231 = vector.broadcast %10 : vector<1x128xf32> to vector<8x128xf32>
    %232 = arith.addf %230, %231 : vector<8x128xf32>
    %233 = vector.extract_strided_slice %232 {offsets = [0, 0], sizes = [8, 96], strides = [1, 1]} : vector<8x128xf32> to vector<8x96xf32>
    %234 = arith.negf %233 : vector<8x96xf32>
    %235 = math.exp %234 : vector<8x96xf32>
    %cst_42 = arith.constant 1.000000e+00 : f32
    %236 = vector.broadcast %cst_42 : f32 to vector<8x96xf32>
    %237 = arith.addf %236, %235 : vector<8x96xf32>
    %238 = arith.divf %236, %237 : vector<8x96xf32>
    %239 = vector.extract_strided_slice %238 {offsets = [0, 0], sizes = [8, 32], strides = [1, 1]} : vector<8x96xf32> to vector<8x32xf32>
    %240 = vector.extract_strided_slice %238 {offsets = [0, 32], sizes = [8, 32], strides = [1, 1]} : vector<8x96xf32> to vector<8x32xf32>
    %241 = vector.extract_strided_slice %238 {offsets = [0, 64], sizes = [8, 32], strides = [1, 1]} : vector<8x96xf32> to vector<8x32xf32>
    %242 = vector.extract_strided_slice %232 {offsets = [0, 96], sizes = [8, 32], strides = [1, 1]} : vector<8x128xf32> to vector<8x32xf32>
    %243 = math.tanh %242 : vector<8x32xf32>
    %244 = arith.mulf %240, %186 : vector<8x32xf32>
    %245 = arith.mulf %239, %243 : vector<8x32xf32>
    %246 = arith.addf %244, %245 : vector<8x32xf32>
    %247 = math.tanh %246 : vector<8x32xf32>
    %248 = arith.mulf %241, %247 : vector<8x32xf32>
    %c16 = arith.constant 16 : index
    %c0_43 = arith.constant 0 : index
    %249 = vector.load %arg8[%c16, %c0_43] : memref<64x32xf32, #tpu.memory_space<vmem>>, vector<8x32xf32>
    tpu.vector_store %arg8[%c16, %c0_43], %248 {strides = array<i32>} : memref<64x32xf32, #tpu.memory_space<vmem>>, vector<8x32xf32>,
    %250 = vector.extract_strided_slice %5 {offsets = [40, 0], sizes = [8, 128], strides = [1, 1]} : vector<64x128xf32> to vector<8x128xf32>
    %cst_44 = arith.constant dense<0.000000e+00> : vector<8x128xf32>
    %251 = tpu.matmul %208, %6, %cst_44 {dimension_numbers = #tpu.dot_dimension_numbers<[1], [0], [0], [1], [0, 0, 1, 1], [], []>} : vector<8x32xf32>, vector<32x128xf32>, vector<8x128xf32> -> vector<8x128xf32>
    %252 = arith.addf %250, %251 : vector<8x128xf32>
    %253 = vector.extract_strided_slice %252 {offsets = [0, 0], sizes = [8, 96], strides = [1, 1]} : vector<8x128xf32> to vector<8x96xf32>
    %254 = arith.negf %253 : vector<8x96xf32>
    %255 = math.exp %254 : vector<8x96xf32>
    %cst_45 = arith.constant 1.000000e+00 : f32
    %256 = vector.broadcast %cst_45 : f32 to vector<8x96xf32>
    %257 = arith.addf %256, %255 : vector<8x96xf32>
    %258 = arith.divf %256, %257 : vector<8x96xf32>
    %259 = vector.extract_strided_slice %258 {offsets = [0, 0], sizes = [8, 32], strides = [1, 1]} : vector<8x96xf32> to vector<8x32xf32>
    %260 = vector.extract_strided_slice %258 {offsets = [0, 32], sizes = [8, 32], strides = [1, 1]} : vector<8x96xf32> to vector<8x32xf32>
    %261 = vector.extract_strided_slice %258 {offsets = [0, 64], sizes = [8, 32], strides = [1, 1]} : vector<8x96xf32> to vector<8x32xf32>
    %262 = vector.extract_strided_slice %252 {offsets = [0, 96], sizes = [8, 32], strides = [1, 1]} : vector<8x128xf32> to vector<8x32xf32>
    %263 = math.tanh %262 : vector<8x32xf32>
    %264 = arith.mulf %260, %206 : vector<8x32xf32>
    %265 = arith.mulf %259, %263 : vector<8x32xf32>
    %266 = arith.addf %264, %265 : vector<8x32xf32>
    %267 = math.tanh %266 : vector<8x32xf32>
    %268 = arith.mulf %261, %267 : vector<8x32xf32>
    %269 = tpu.concatenate %208, %228 in 1 : vector<8x32xf32>, vector<8x32xf32> -> vector<8x64xf32>
    %cst_46 = arith.constant dense<0.000000e+00> : vector<8x128xf32>
    %270 = tpu.matmul %269, %7, %cst_46 {dimension_numbers = #tpu.dot_dimension_numbers<[1], [0], [0], [1], [0, 0, 1, 1], [], []>} : vector<8x64xf32>, vector<64x128xf32>, vector<8x128xf32> -> vector<8x128xf32>
    %271 = vector.broadcast %9 : vector<1x128xf32> to vector<8x128xf32>
    %272 = arith.addf %270, %271 : vector<8x128xf32>
    %273 = vector.extract_strided_slice %272 {offsets = [0, 0], sizes = [8, 96], strides = [1, 1]} : vector<8x128xf32> to vector<8x96xf32>
    %274 = arith.negf %273 : vector<8x96xf32>
    %275 = math.exp %274 : vector<8x96xf32>
    %cst_47 = arith.constant 1.000000e+00 : f32
    %276 = vector.broadcast %cst_47 : f32 to vector<8x96xf32>
    %277 = arith.addf %276, %275 : vector<8x96xf32>
    %278 = arith.divf %276, %277 : vector<8x96xf32>
    %279 = vector.extract_strided_slice %278 {offsets = [0, 0], sizes = [8, 32], strides = [1, 1]} : vector<8x96xf32> to vector<8x32xf32>
    %280 = vector.extract_strided_slice %278 {offsets = [0, 32], sizes = [8, 32], strides = [1, 1]} : vector<8x96xf32> to vector<8x32xf32>
    %281 = vector.extract_strided_slice %278 {offsets = [0, 64], sizes = [8, 32], strides = [1, 1]} : vector<8x96xf32> to vector<8x32xf32>
    %282 = vector.extract_strided_slice %272 {offsets = [0, 96], sizes = [8, 32], strides = [1, 1]} : vector<8x128xf32> to vector<8x32xf32>
    %283 = math.tanh %282 : vector<8x32xf32>
    %284 = arith.mulf %280, %226 : vector<8x32xf32>
    %285 = arith.mulf %279, %283 : vector<8x32xf32>
    %286 = arith.addf %284, %285 : vector<8x32xf32>
    %287 = math.tanh %286 : vector<8x32xf32>
    %288 = arith.mulf %281, %287 : vector<8x32xf32>
    %289 = tpu.concatenate %228, %248 in 1 : vector<8x32xf32>, vector<8x32xf32> -> vector<8x64xf32>
    %cst_48 = arith.constant dense<0.000000e+00> : vector<8x128xf32>
    %290 = tpu.matmul %289, %8, %cst_48 {dimension_numbers = #tpu.dot_dimension_numbers<[1], [0], [0], [1], [0, 0, 1, 1], [], []>} : vector<8x64xf32>, vector<64x128xf32>, vector<8x128xf32> -> vector<8x128xf32>
    %291 = vector.broadcast %10 : vector<1x128xf32> to vector<8x128xf32>
    %292 = arith.addf %290, %291 : vector<8x128xf32>
    %293 = vector.extract_strided_slice %292 {offsets = [0, 0], sizes = [8, 96], strides = [1, 1]} : vector<8x128xf32> to vector<8x96xf32>
    %294 = arith.negf %293 : vector<8x96xf32>
    %295 = math.exp %294 : vector<8x96xf32>
    %cst_49 = arith.constant 1.000000e+00 : f32
    %296 = vector.broadcast %cst_49 : f32 to vector<8x96xf32>
    %297 = arith.addf %296, %295 : vector<8x96xf32>
    %298 = arith.divf %296, %297 : vector<8x96xf32>
    %299 = vector.extract_strided_slice %298 {offsets = [0, 0], sizes = [8, 32], strides = [1, 1]} : vector<8x96xf32> to vector<8x32xf32>
    %300 = vector.extract_strided_slice %298 {offsets = [0, 32], sizes = [8, 32], strides = [1, 1]} : vector<8x96xf32> to vector<8x32xf32>
    %301 = vector.extract_strided_slice %298 {offsets = [0, 64], sizes = [8, 32], strides = [1, 1]} : vector<8x96xf32> to vector<8x32xf32>
    %302 = vector.extract_strided_slice %292 {offsets = [0, 96], sizes = [8, 32], strides = [1, 1]} : vector<8x128xf32> to vector<8x32xf32>
    %303 = math.tanh %302 : vector<8x32xf32>
    %304 = arith.mulf %300, %246 : vector<8x32xf32>
    %305 = arith.mulf %299, %303 : vector<8x32xf32>
    %306 = arith.addf %304, %305 : vector<8x32xf32>
    %307 = math.tanh %306 : vector<8x32xf32>
    %308 = arith.mulf %301, %307 : vector<8x32xf32>
    %c24 = arith.constant 24 : index
    %c0_50 = arith.constant 0 : index
    %309 = vector.load %arg8[%c24, %c0_50] : memref<64x32xf32, #tpu.memory_space<vmem>>, vector<8x32xf32>
    tpu.vector_store %arg8[%c24, %c0_50], %308 {strides = array<i32>} : memref<64x32xf32, #tpu.memory_space<vmem>>, vector<8x32xf32>,
    %310 = vector.extract_strided_slice %5 {offsets = [48, 0], sizes = [8, 128], strides = [1, 1]} : vector<64x128xf32> to vector<8x128xf32>
    %cst_51 = arith.constant dense<0.000000e+00> : vector<8x128xf32>
    %311 = tpu.matmul %268, %6, %cst_51 {dimension_numbers = #tpu.dot_dimension_numbers<[1], [0], [0], [1], [0, 0, 1, 1], [], []>} : vector<8x32xf32>, vector<32x128xf32>, vector<8x128xf32> -> vector<8x128xf32>
    %312 = arith.addf %310, %311 : vector<8x128xf32>
    %313 = vector.extract_strided_slice %312 {offsets = [0, 0], sizes = [8, 96], strides = [1, 1]} : vector<8x128xf32> to vector<8x96xf32>
    %314 = arith.negf %313 : vector<8x96xf32>
    %315 = math.exp %314 : vector<8x96xf32>
    %cst_52 = arith.constant 1.000000e+00 : f32
    %316 = vector.broadcast %cst_52 : f32 to vector<8x96xf32>
    %317 = arith.addf %316, %315 : vector<8x96xf32>
    %318 = arith.divf %316, %317 : vector<8x96xf32>
    %319 = vector.extract_strided_slice %318 {offsets = [0, 0], sizes = [8, 32], strides = [1, 1]} : vector<8x96xf32> to vector<8x32xf32>
    %320 = vector.extract_strided_slice %318 {offsets = [0, 32], sizes = [8, 32], strides = [1, 1]} : vector<8x96xf32> to vector<8x32xf32>
    %321 = vector.extract_strided_slice %318 {offsets = [0, 64], sizes = [8, 32], strides = [1, 1]} : vector<8x96xf32> to vector<8x32xf32>
    %322 = vector.extract_strided_slice %312 {offsets = [0, 96], sizes = [8, 32], strides = [1, 1]} : vector<8x128xf32> to vector<8x32xf32>
    %323 = math.tanh %322 : vector<8x32xf32>
    %324 = arith.mulf %320, %266 : vector<8x32xf32>
    %325 = arith.mulf %319, %323 : vector<8x32xf32>
    %326 = arith.addf %324, %325 : vector<8x32xf32>
    %327 = math.tanh %326 : vector<8x32xf32>
    %328 = arith.mulf %321, %327 : vector<8x32xf32>
    %329 = tpu.concatenate %268, %288 in 1 : vector<8x32xf32>, vector<8x32xf32> -> vector<8x64xf32>
    %cst_53 = arith.constant dense<0.000000e+00> : vector<8x128xf32>
    %330 = tpu.matmul %329, %7, %cst_53 {dimension_numbers = #tpu.dot_dimension_numbers<[1], [0], [0], [1], [0, 0, 1, 1], [], []>} : vector<8x64xf32>, vector<64x128xf32>, vector<8x128xf32> -> vector<8x128xf32>
    %331 = vector.broadcast %9 : vector<1x128xf32> to vector<8x128xf32>
    %332 = arith.addf %330, %331 : vector<8x128xf32>
    %333 = vector.extract_strided_slice %332 {offsets = [0, 0], sizes = [8, 96], strides = [1, 1]} : vector<8x128xf32> to vector<8x96xf32>
    %334 = arith.negf %333 : vector<8x96xf32>
    %335 = math.exp %334 : vector<8x96xf32>
    %cst_54 = arith.constant 1.000000e+00 : f32
    %336 = vector.broadcast %cst_54 : f32 to vector<8x96xf32>
    %337 = arith.addf %336, %335 : vector<8x96xf32>
    %338 = arith.divf %336, %337 : vector<8x96xf32>
    %339 = vector.extract_strided_slice %338 {offsets = [0, 0], sizes = [8, 32], strides = [1, 1]} : vector<8x96xf32> to vector<8x32xf32>
    %340 = vector.extract_strided_slice %338 {offsets = [0, 32], sizes = [8, 32], strides = [1, 1]} : vector<8x96xf32> to vector<8x32xf32>
    %341 = vector.extract_strided_slice %338 {offsets = [0, 64], sizes = [8, 32], strides = [1, 1]} : vector<8x96xf32> to vector<8x32xf32>
    %342 = vector.extract_strided_slice %332 {offsets = [0, 96], sizes = [8, 32], strides = [1, 1]} : vector<8x128xf32> to vector<8x32xf32>
    %343 = math.tanh %342 : vector<8x32xf32>
    %344 = arith.mulf %340, %286 : vector<8x32xf32>
    %345 = arith.mulf %339, %343 : vector<8x32xf32>
    %346 = arith.addf %344, %345 : vector<8x32xf32>
    %347 = math.tanh %346 : vector<8x32xf32>
    %348 = arith.mulf %341, %347 : vector<8x32xf32>
    %349 = tpu.concatenate %288, %308 in 1 : vector<8x32xf32>, vector<8x32xf32> -> vector<8x64xf32>
    %cst_55 = arith.constant dense<0.000000e+00> : vector<8x128xf32>
    %350 = tpu.matmul %349, %8, %cst_55 {dimension_numbers = #tpu.dot_dimension_numbers<[1], [0], [0], [1], [0, 0, 1, 1], [], []>} : vector<8x64xf32>, vector<64x128xf32>, vector<8x128xf32> -> vector<8x128xf32>
    %351 = vector.broadcast %10 : vector<1x128xf32> to vector<8x128xf32>
    %352 = arith.addf %350, %351 : vector<8x128xf32>
    %353 = vector.extract_strided_slice %352 {offsets = [0, 0], sizes = [8, 96], strides = [1, 1]} : vector<8x128xf32> to vector<8x96xf32>
    %354 = arith.negf %353 : vector<8x96xf32>
    %355 = math.exp %354 : vector<8x96xf32>
    %cst_56 = arith.constant 1.000000e+00 : f32
    %356 = vector.broadcast %cst_56 : f32 to vector<8x96xf32>
    %357 = arith.addf %356, %355 : vector<8x96xf32>
    %358 = arith.divf %356, %357 : vector<8x96xf32>
    %359 = vector.extract_strided_slice %358 {offsets = [0, 0], sizes = [8, 32], strides = [1, 1]} : vector<8x96xf32> to vector<8x32xf32>
    %360 = vector.extract_strided_slice %358 {offsets = [0, 32], sizes = [8, 32], strides = [1, 1]} : vector<8x96xf32> to vector<8x32xf32>
    %361 = vector.extract_strided_slice %358 {offsets = [0, 64], sizes = [8, 32], strides = [1, 1]} : vector<8x96xf32> to vector<8x32xf32>
    %362 = vector.extract_strided_slice %352 {offsets = [0, 96], sizes = [8, 32], strides = [1, 1]} : vector<8x128xf32> to vector<8x32xf32>
    %363 = math.tanh %362 : vector<8x32xf32>
    %364 = arith.mulf %360, %306 : vector<8x32xf32>
    %365 = arith.mulf %359, %363 : vector<8x32xf32>
    %366 = arith.addf %364, %365 : vector<8x32xf32>
    %367 = math.tanh %366 : vector<8x32xf32>
    %368 = arith.mulf %361, %367 : vector<8x32xf32>
    %c32 = arith.constant 32 : index
    %c0_57 = arith.constant 0 : index
    %369 = vector.load %arg8[%c32, %c0_57] : memref<64x32xf32, #tpu.memory_space<vmem>>, vector<8x32xf32>
    tpu.vector_store %arg8[%c32, %c0_57], %368 {strides = array<i32>} : memref<64x32xf32, #tpu.memory_space<vmem>>, vector<8x32xf32>,
    %370 = vector.extract_strided_slice %5 {offsets = [56, 0], sizes = [8, 128], strides = [1, 1]} : vector<64x128xf32> to vector<8x128xf32>
    %cst_58 = arith.constant dense<0.000000e+00> : vector<8x128xf32>
    %371 = tpu.matmul %328, %6, %cst_58 {dimension_numbers = #tpu.dot_dimension_numbers<[1], [0], [0], [1], [0, 0, 1, 1], [], []>} : vector<8x32xf32>, vector<32x128xf32>, vector<8x128xf32> -> vector<8x128xf32>
    %372 = arith.addf %370, %371 : vector<8x128xf32>
    %373 = vector.extract_strided_slice %372 {offsets = [0, 0], sizes = [8, 96], strides = [1, 1]} : vector<8x128xf32> to vector<8x96xf32>
    %374 = arith.negf %373 : vector<8x96xf32>
    %375 = math.exp %374 : vector<8x96xf32>
    %cst_59 = arith.constant 1.000000e+00 : f32
    %376 = vector.broadcast %cst_59 : f32 to vector<8x96xf32>
    %377 = arith.addf %376, %375 : vector<8x96xf32>
    %378 = arith.divf %376, %377 : vector<8x96xf32>
    %379 = vector.extract_strided_slice %378 {offsets = [0, 0], sizes = [8, 32], strides = [1, 1]} : vector<8x96xf32> to vector<8x32xf32>
    %380 = vector.extract_strided_slice %378 {offsets = [0, 32], sizes = [8, 32], strides = [1, 1]} : vector<8x96xf32> to vector<8x32xf32>
    %381 = vector.extract_strided_slice %378 {offsets = [0, 64], sizes = [8, 32], strides = [1, 1]} : vector<8x96xf32> to vector<8x32xf32>
    %382 = vector.extract_strided_slice %372 {offsets = [0, 96], sizes = [8, 32], strides = [1, 1]} : vector<8x128xf32> to vector<8x32xf32>
    %383 = math.tanh %382 : vector<8x32xf32>
    %384 = arith.mulf %380, %326 : vector<8x32xf32>
    %385 = arith.mulf %379, %383 : vector<8x32xf32>
    %386 = arith.addf %384, %385 : vector<8x32xf32>
    %387 = math.tanh %386 : vector<8x32xf32>
    %388 = arith.mulf %381, %387 : vector<8x32xf32>
    %389 = tpu.concatenate %328, %348 in 1 : vector<8x32xf32>, vector<8x32xf32> -> vector<8x64xf32>
    %cst_60 = arith.constant dense<0.000000e+00> : vector<8x128xf32>
    %390 = tpu.matmul %389, %7, %cst_60 {dimension_numbers = #tpu.dot_dimension_numbers<[1], [0], [0], [1], [0, 0, 1, 1], [], []>} : vector<8x64xf32>, vector<64x128xf32>, vector<8x128xf32> -> vector<8x128xf32>
    %391 = vector.broadcast %9 : vector<1x128xf32> to vector<8x128xf32>
    %392 = arith.addf %390, %391 : vector<8x128xf32>
    %393 = vector.extract_strided_slice %392 {offsets = [0, 0], sizes = [8, 96], strides = [1, 1]} : vector<8x128xf32> to vector<8x96xf32>
    %394 = arith.negf %393 : vector<8x96xf32>
    %395 = math.exp %394 : vector<8x96xf32>
    %cst_61 = arith.constant 1.000000e+00 : f32
    %396 = vector.broadcast %cst_61 : f32 to vector<8x96xf32>
    %397 = arith.addf %396, %395 : vector<8x96xf32>
    %398 = arith.divf %396, %397 : vector<8x96xf32>
    %399 = vector.extract_strided_slice %398 {offsets = [0, 0], sizes = [8, 32], strides = [1, 1]} : vector<8x96xf32> to vector<8x32xf32>
    %400 = vector.extract_strided_slice %398 {offsets = [0, 32], sizes = [8, 32], strides = [1, 1]} : vector<8x96xf32> to vector<8x32xf32>
    %401 = vector.extract_strided_slice %398 {offsets = [0, 64], sizes = [8, 32], strides = [1, 1]} : vector<8x96xf32> to vector<8x32xf32>
    %402 = vector.extract_strided_slice %392 {offsets = [0, 96], sizes = [8, 32], strides = [1, 1]} : vector<8x128xf32> to vector<8x32xf32>
    %403 = math.tanh %402 : vector<8x32xf32>
    %404 = arith.mulf %400, %346 : vector<8x32xf32>
    %405 = arith.mulf %399, %403 : vector<8x32xf32>
    %406 = arith.addf %404, %405 : vector<8x32xf32>
    %407 = math.tanh %406 : vector<8x32xf32>
    %408 = arith.mulf %401, %407 : vector<8x32xf32>
    %409 = tpu.concatenate %348, %368 in 1 : vector<8x32xf32>, vector<8x32xf32> -> vector<8x64xf32>
    %cst_62 = arith.constant dense<0.000000e+00> : vector<8x128xf32>
    %410 = tpu.matmul %409, %8, %cst_62 {dimension_numbers = #tpu.dot_dimension_numbers<[1], [0], [0], [1], [0, 0, 1, 1], [], []>} : vector<8x64xf32>, vector<64x128xf32>, vector<8x128xf32> -> vector<8x128xf32>
    %411 = vector.broadcast %10 : vector<1x128xf32> to vector<8x128xf32>
    %412 = arith.addf %410, %411 : vector<8x128xf32>
    %413 = vector.extract_strided_slice %412 {offsets = [0, 0], sizes = [8, 96], strides = [1, 1]} : vector<8x128xf32> to vector<8x96xf32>
    %414 = arith.negf %413 : vector<8x96xf32>
    %415 = math.exp %414 : vector<8x96xf32>
    %cst_63 = arith.constant 1.000000e+00 : f32
    %416 = vector.broadcast %cst_63 : f32 to vector<8x96xf32>
    %417 = arith.addf %416, %415 : vector<8x96xf32>
    %418 = arith.divf %416, %417 : vector<8x96xf32>
    %419 = vector.extract_strided_slice %418 {offsets = [0, 0], sizes = [8, 32], strides = [1, 1]} : vector<8x96xf32> to vector<8x32xf32>
    %420 = vector.extract_strided_slice %418 {offsets = [0, 32], sizes = [8, 32], strides = [1, 1]} : vector<8x96xf32> to vector<8x32xf32>
    %421 = vector.extract_strided_slice %418 {offsets = [0, 64], sizes = [8, 32], strides = [1, 1]} : vector<8x96xf32> to vector<8x32xf32>
    %422 = vector.extract_strided_slice %412 {offsets = [0, 96], sizes = [8, 32], strides = [1, 1]} : vector<8x128xf32> to vector<8x32xf32>
    %423 = math.tanh %422 : vector<8x32xf32>
    %424 = arith.mulf %420, %366 : vector<8x32xf32>
    %425 = arith.mulf %419, %423 : vector<8x32xf32>
    %426 = arith.addf %424, %425 : vector<8x32xf32>
    %427 = math.tanh %426 : vector<8x32xf32>
    %428 = arith.mulf %421, %427 : vector<8x32xf32>
    %c40 = arith.constant 40 : index
    %c0_64 = arith.constant 0 : index
    %429 = vector.load %arg8[%c40, %c0_64] : memref<64x32xf32, #tpu.memory_space<vmem>>, vector<8x32xf32>
    tpu.vector_store %arg8[%c40, %c0_64], %428 {strides = array<i32>} : memref<64x32xf32, #tpu.memory_space<vmem>>, vector<8x32xf32>,
    %430 = tpu.concatenate %388, %408 in 1 : vector<8x32xf32>, vector<8x32xf32> -> vector<8x64xf32>
    %cst_65 = arith.constant dense<0.000000e+00> : vector<8x128xf32>
    %431 = tpu.matmul %430, %7, %cst_65 {dimension_numbers = #tpu.dot_dimension_numbers<[1], [0], [0], [1], [0, 0, 1, 1], [], []>} : vector<8x64xf32>, vector<64x128xf32>, vector<8x128xf32> -> vector<8x128xf32>
    %432 = vector.broadcast %9 : vector<1x128xf32> to vector<8x128xf32>
    %433 = arith.addf %431, %432 : vector<8x128xf32>
    %434 = vector.extract_strided_slice %433 {offsets = [0, 0], sizes = [8, 96], strides = [1, 1]} : vector<8x128xf32> to vector<8x96xf32>
    %435 = arith.negf %434 : vector<8x96xf32>
    %436 = math.exp %435 : vector<8x96xf32>
    %cst_66 = arith.constant 1.000000e+00 : f32
    %437 = vector.broadcast %cst_66 : f32 to vector<8x96xf32>
    %438 = arith.addf %437, %436 : vector<8x96xf32>
    %439 = arith.divf %437, %438 : vector<8x96xf32>
    %440 = vector.extract_strided_slice %439 {offsets = [0, 0], sizes = [8, 32], strides = [1, 1]} : vector<8x96xf32> to vector<8x32xf32>
    %441 = vector.extract_strided_slice %439 {offsets = [0, 32], sizes = [8, 32], strides = [1, 1]} : vector<8x96xf32> to vector<8x32xf32>
    %442 = vector.extract_strided_slice %439 {offsets = [0, 64], sizes = [8, 32], strides = [1, 1]} : vector<8x96xf32> to vector<8x32xf32>
    %443 = vector.extract_strided_slice %433 {offsets = [0, 96], sizes = [8, 32], strides = [1, 1]} : vector<8x128xf32> to vector<8x32xf32>
    %444 = math.tanh %443 : vector<8x32xf32>
    %445 = arith.mulf %441, %406 : vector<8x32xf32>
    %446 = arith.mulf %440, %444 : vector<8x32xf32>
    %447 = arith.addf %445, %446 : vector<8x32xf32>
    %448 = math.tanh %447 : vector<8x32xf32>
    %449 = arith.mulf %442, %448 : vector<8x32xf32>
    %450 = tpu.concatenate %408, %428 in 1 : vector<8x32xf32>, vector<8x32xf32> -> vector<8x64xf32>
    %cst_67 = arith.constant dense<0.000000e+00> : vector<8x128xf32>
    %451 = tpu.matmul %450, %8, %cst_67 {dimension_numbers = #tpu.dot_dimension_numbers<[1], [0], [0], [1], [0, 0, 1, 1], [], []>} : vector<8x64xf32>, vector<64x128xf32>, vector<8x128xf32> -> vector<8x128xf32>
    %452 = vector.broadcast %10 : vector<1x128xf32> to vector<8x128xf32>
    %453 = arith.addf %451, %452 : vector<8x128xf32>
    %454 = vector.extract_strided_slice %453 {offsets = [0, 0], sizes = [8, 96], strides = [1, 1]} : vector<8x128xf32> to vector<8x96xf32>
    %455 = arith.negf %454 : vector<8x96xf32>
    %456 = math.exp %455 : vector<8x96xf32>
    %cst_68 = arith.constant 1.000000e+00 : f32
    %457 = vector.broadcast %cst_68 : f32 to vector<8x96xf32>
    %458 = arith.addf %457, %456 : vector<8x96xf32>
    %459 = arith.divf %457, %458 : vector<8x96xf32>
    %460 = vector.extract_strided_slice %459 {offsets = [0, 0], sizes = [8, 32], strides = [1, 1]} : vector<8x96xf32> to vector<8x32xf32>
    %461 = vector.extract_strided_slice %459 {offsets = [0, 32], sizes = [8, 32], strides = [1, 1]} : vector<8x96xf32> to vector<8x32xf32>
    %462 = vector.extract_strided_slice %459 {offsets = [0, 64], sizes = [8, 32], strides = [1, 1]} : vector<8x96xf32> to vector<8x32xf32>
    %463 = vector.extract_strided_slice %453 {offsets = [0, 96], sizes = [8, 32], strides = [1, 1]} : vector<8x128xf32> to vector<8x32xf32>
    %464 = math.tanh %463 : vector<8x32xf32>
    %465 = arith.mulf %461, %426 : vector<8x32xf32>
    %466 = arith.mulf %460, %464 : vector<8x32xf32>
    %467 = arith.addf %465, %466 : vector<8x32xf32>
    %468 = math.tanh %467 : vector<8x32xf32>
    %469 = arith.mulf %462, %468 : vector<8x32xf32>
    %c48 = arith.constant 48 : index
    %c0_69 = arith.constant 0 : index
    %470 = vector.load %arg8[%c48, %c0_69] : memref<64x32xf32, #tpu.memory_space<vmem>>, vector<8x32xf32>
    tpu.vector_store %arg8[%c48, %c0_69], %469 {strides = array<i32>} : memref<64x32xf32, #tpu.memory_space<vmem>>, vector<8x32xf32>,
    %471 = tpu.concatenate %449, %469 in 1 : vector<8x32xf32>, vector<8x32xf32> -> vector<8x64xf32>
    %cst_70 = arith.constant dense<0.000000e+00> : vector<8x128xf32>
    %472 = tpu.matmul %471, %8, %cst_70 {dimension_numbers = #tpu.dot_dimension_numbers<[1], [0], [0], [1], [0, 0, 1, 1], [], []>} : vector<8x64xf32>, vector<64x128xf32>, vector<8x128xf32> -> vector<8x128xf32>
    %473 = vector.broadcast %10 : vector<1x128xf32> to vector<8x128xf32>
    %474 = arith.addf %472, %473 : vector<8x128xf32>
    %475 = vector.extract_strided_slice %474 {offsets = [0, 0], sizes = [8, 96], strides = [1, 1]} : vector<8x128xf32> to vector<8x96xf32>
    %476 = arith.negf %475 : vector<8x96xf32>
    %477 = math.exp %476 : vector<8x96xf32>
    %cst_71 = arith.constant 1.000000e+00 : f32
    %478 = vector.broadcast %cst_71 : f32 to vector<8x96xf32>
    %479 = arith.addf %478, %477 : vector<8x96xf32>
    %480 = arith.divf %478, %479 : vector<8x96xf32>
    %481 = vector.extract_strided_slice %480 {offsets = [0, 0], sizes = [8, 32], strides = [1, 1]} : vector<8x96xf32> to vector<8x32xf32>
    %482 = vector.extract_strided_slice %480 {offsets = [0, 32], sizes = [8, 32], strides = [1, 1]} : vector<8x96xf32> to vector<8x32xf32>
    %483 = vector.extract_strided_slice %480 {offsets = [0, 64], sizes = [8, 32], strides = [1, 1]} : vector<8x96xf32> to vector<8x32xf32>
    %484 = vector.extract_strided_slice %474 {offsets = [0, 96], sizes = [8, 32], strides = [1, 1]} : vector<8x128xf32> to vector<8x32xf32>
    %485 = math.tanh %484 : vector<8x32xf32>
    %486 = arith.mulf %482, %467 : vector<8x32xf32>
    %487 = arith.mulf %481, %485 : vector<8x32xf32>
    %488 = arith.addf %486, %487 : vector<8x32xf32>
    %489 = math.tanh %488 : vector<8x32xf32>
    %490 = arith.mulf %483, %489 : vector<8x32xf32>
    %c56 = arith.constant 56 : index
    %c0_72 = arith.constant 0 : index
    %491 = vector.load %arg8[%c56, %c0_72] : memref<64x32xf32, #tpu.memory_space<vmem>>, vector<8x32xf32>
    tpu.vector_store %arg8[%c56, %c0_72], %490 {strides = array<i32>} : memref<64x32xf32, #tpu.memory_space<vmem>>, vector<8x32xf32>,
    return
  }
}

</mosaic_0001>

<bundles_post_ra>
// kernel: _lstm_forward_impl.1
= control target key start
LH: loop header
LB: loop body
LE: loop exit
PB: predicated region body
PF: predicated region fallthrough
CT: control target
= control target key end

     0   :  { %13 = vsyncpa [#allocation3], 0  ;;  %s2809_s0 = inlined_call_operand.vmem [shape: f32[64,16], index: 0, kind: input, shape index: {}]   ;;  %s2810_s1 = inlined_call_operand.vmem [shape: f32[16,128], index: 1, kind: input, shape index: {}]   ;;  %s2811_s2 = inlined_call_operand.hbm [shape: f32[32,128], index: 2, kind: input, shape index: {}]   ;;  %s2812_s3 = inlined_call_operand.vmem [shape: f32[1,128], index: 3, kind: input, shape index: {}]   ;;  %s2813_s4 = inlined_call_operand.vmem [shape: f32[64,128], index: 4, kind: input, shape index: {}]   ;;  %s2814_s5 = inlined_call_operand.vmem [shape: f32[1,128], index: 5, kind: input, shape index: {}]   ;;  %s2815_s6 = inlined_call_operand.hbm [shape: f32[64,128], index: 6, kind: input, shape index: {}]   ;;  %s2816_s7 = inlined_call_operand.vmem [shape: f32[1,128], index: 7, kind: input, shape index: {}]   ;;  %s2817_s8 = inlined_call_operand.vmem [shape: f32[64,32], index: 8, kind: output, shape index: {}]  }
   0x1   :  { %s23_s29 = sshll.u32 %s2811_s2, 4  ;;  %s24_s29 = int_to_ptr.hbm [resolvable:$true] %s23_s29 }
   0x2   :  { %14 = vsyncpa [#allocation5], 0  ;;  %s2115_s30 = smov [#allocation2]   ;;  %s42_s12 = sshll.u32 %s2815_s6, 4  ;;  %s43_s12 = int_to_ptr.hbm [resolvable:$true] %s42_s12 }
   0x3   :  { %s25_s9 = sshll.u32 %s2115_s30, 4  ;;  %s2116_s13 = smov 128   ;;  %s26_s9 = int_to_ptr.vmem [resolvable:$true] %s25_s9 }
   0x4   :  { %s2117_s14 = smov 8   ;;  %s2118_s15 = smov [#allocation4]  }
   0x5   :  { %31 = dma.hbm_to_vmem [thread:$0]  %s24_s29, 512, %s26_s9, [#allocation3], %s2116_s13, %s2116_s13, %s2117_s14  }
   0x6   :  { %s44_s16 = sshll.u32 %s2118_s15, 4  ;;  %s45_s16 = int_to_ptr.vmem [resolvable:$true] %s44_s16 }
   0x7   :  { %50 = dma.hbm_to_vmem [thread:$0]  %s43_s12, 1024, %s45_s16, [#allocation5], %s2116_s13, %s2116_s13, %s2117_s14  }
   0x8   :  { %2111 = dma.done.wait [#allocation3], 512  }
   0x9   :  { %2112 = vsyncadd [#allocation3], 4294966784 }
   0xa   :  { %2113 = dma.done.wait [#allocation5], 1024  }
   0xb   :  { %2114 = vsyncadd [#allocation5], 4294966272  ;;  %v2174_v0 = vld [vmem:[#allocation2 + $0x18] sm:$0xff]  ;;  %v70_v1 = vld [vmem:[%s2810_s1 + $0x8] sm:$0xff]  ;;  %vm75_vm0 = vcmask 130048   ;;  %v2119_v7 = vmov 0.0  }
   0xc   :  { %v2179_v2 = vld [vmem:[#allocation2 + $0x10] sm:$0xff]  ;;  %179 = vmatpush.msra.mxu1 %v2174_v0  ;;  %114 = vmatpush.msra.mxu0 %v70_v1  ;;  %v69_v3 = vld [vmem:[%s2810_s1] sm:$0xff]  ;;  %v2188_v5 = vld [vmem:[#allocation2 + $0x8] sm:$0xff]  ;;  %s2120_s22 = smov 32   ;;  %s2121_s2 = smov 64   ;;  %vm163_vm5 = vcmask 261120  }
   0xd   :  { %v61_v4 = vld [vmem:[%s2809_s0] sm:$0xff]  ;;  %1835 = vmatpush.msra.mxu2 %v70_v1  ;;  %v2219_v33 = vld [vmem:[%s2813_s4 + $0x38] sm:$0xff]  ;;  %v2224_v34 = vld [vmem:[%s2813_s4 + $0x30] sm:$0xff]  ;;  %vm293_vm6 = vcmask 523264   ;;  %s2122_s24 = smov 96  }
   0xe   :  { %180 = vmatpush.msra.mxu1 %v2179_v2  ;;  %115 = vmatpush.msra.mxu0 %v69_v3  ;;  %v2192_v6 = vld [vmem:[#allocation2] sm:$0xff]  ;;  %v68_v35 = vld [vmem:[%s2809_s0 + $0x38] sm:$0xff]  ;;  %v2233_v36 = vld [vmem:[%s2813_s4 + $0x28] sm:$0xff] }
   0xf   :  { %1780 = vmatmul.msk.f32.vlgmr.msra.gmra.mxu0 %vm75_vm0, %v61_v4  ;;  %1836 = vmatpush.msra.mxu2 %v69_v3  ;;  %v2207_v8 = vld [vmem:[%s2812_s3] ss:$0 sm:$0xff]  ;;  %v2248_v38 = vld [vmem:[%s2813_s4 + $0x18] sm:$0xff]  ;;  %v2255_v39 = vld [vmem:[%s2813_s4 + $0x10] sm:$0xff] }
  0x10   :  { %181 = vmatpush.msra.mxu1 %v2188_v5  ;;  %305 = vmatpush.msra.mxu3 %v2219_v33  ;;  %v2241_v37 = vld [vmem:[%s2813_s4 + $0x20] sm:$0xff]  ;;  %v2262_v40 = vld [vmem:[%s2813_s4 + $0x8] sm:$0xff] }
  0x11   :  { %242 = vmatpush.msrb.mxu2 %v2174_v0  ;;  %v2273_v43 = vld [vmem:[%s2813_s4] sm:$0xff]  ;;  %v62_v44 = vld [vmem:[%s2809_s0 + $0x8] sm:$0xff] }
  0x12   :  { %182 = vmatpush.msra.mxu1 %v2192_v6  ;;  %1787 = vmatmul.msk.f32.vlgmr.msra.gmra.mxu2 %vm75_vm0, %v68_v35  ;;  %v2302_v52 = vld [vmem:[%s2814_s5] ss:$0 sm:$0xff] }
  0x13   :  { %243 = vmatpush.msrb.mxu2 %v2179_v2  ;;  %183 = vmatmul.f32.vlgmr.msra.gmra.mxu1 %v2119_v7 }
  0x14   :  { %371 = vmatpush.msrb.mxu1 %v2174_v0  ;;  %306 = vmatpush.msra.mxu3 %v2224_v34 }
  0x15   :  { %244 = vmatpush.msrb.mxu2 %v2188_v5 }
  0x16   :  { %372 = vmatpush.msrb.mxu1 %v2179_v2  ;;  %307 = vmatpush.msra.mxu3 %v2233_v36 }
  0x17   :  { %245 = vmatpush.msrb.mxu2 %v2192_v6  ;;  %1781 = vmatmul.msk.f32.gmra.mxu0 %vm75_vm0, %v62_v44 }
  0x18   :  { %373 = vmatpush.msrb.mxu1 %v2188_v5  ;;  %308 = vmatpush.msra.mxu3 %v2241_v37 }
  0x19   :  { %434 = vmatpush.msra.mxu2 %v2219_v33 }
  0x1a   :  { %374 = vmatpush.msrb.mxu1 %v2192_v6  ;;  %309 = vmatpush.msra.mxu3 %v2248_v38 }
  0x1b   :  { %435 = vmatpush.msra.mxu2 %v2224_v34 }
  0x1c   :  { %310 = vmatpush.msra.mxu3 %v2255_v39 }
  0x1d   :  { %436 = vmatpush.msra.mxu2 %v2233_v36 }
  0x1e   :  { %311 = vmatpush.msra.mxu3 %v2262_v40 }
  0x1f   :  { %437 = vmatpush.msra.mxu2 %v2241_v37 }
  0x20   :  { %312 = vmatpush.msra.mxu3 %v2273_v43 }
  0x21   :  { %438 = vmatpush.msra.mxu2 %v2248_v38 }
  0x22   :  { %572 = vmatpush.msrb.mxu3 %v2174_v0 }
  0x23   :  { %439 = vmatpush.msra.mxu2 %v2255_v39 }
  0x24   :  { %573 = vmatpush.msrb.mxu3 %v2179_v2 }
  0x25   :  { %440 = vmatpush.msra.mxu2 %v2262_v40 }
  0x26   :  { %574 = vmatpush.msrb.mxu3 %v2188_v5 }
  0x27   :  { %441 = vmatpush.msra.mxu2 %v2273_v43 }
  0x28   :  { %575 = vmatpush.msrb.mxu3 %v2192_v6 }
  0x8c   :  { %v117_v9 = vpop.f32.mrf.mxu0 }
  0x8d   :  { %v118_v10 = vadd.f32 %v2207_v8, %v117_v9 }
  0x90   :  { %v184_v11 = vpop.f32.mrf.mxu1 }
  0x91   :  { %v187_v12 = vadd.f32 %v184_v11, %v118_v10 }
  0x93   :  { %1848 = vtanh.f32 %v187_v12  ;;  %v1788_v14 = vmul.f32 -1.442695, %v187_v12 }
  0x94   :  { %v120_v48 = vpop.f32.mrf.mxu0 }
  0x95   :  { %1850 = vpow2.f32 %v1788_v14  ;;  %v2296_v47 = vpop.f32.mrf.mxu2  ;;  %v121_v49 = vadd.f32 %v2207_v8, %v120_v48 }
  0x99   :  { %v1849_v13 = vpop.eup %1848 }
  0x9a   :  { %210 = vrot.lane.b32.xlu0 %v1849_v13, %s2120_s22 }
  0x9b   :  { %v1851_v15 = vpop.eup %1850 }
  0x9c   :  { %v191_v16 = vadd.f32 1.0, %v1851_v15 }
  0x9e   :  { %1852 = vrcp.f32 %v191_v16  ;;  %v203_v22 = vand.u32 2147483648, %v191_v16  ;;  %vm197_vm2 = vweird.f32 %v191_v16  ;;  %v201_v23 = vand.u32 2147483647, %v191_v16 }
  0xa0   :  { %v204_v25 = vor.u32 1.1754944e-38, %v203_v22  ;;  %vm202_vm4 = vcmp.eq.f32.partialorder %v201_v23, 8.507059e+37 }
  0xa4   :  { %v1853_v17 = vpop.eup %1852 }
  0xa5   :  { %v193_v18 = vmul.f32 %v1853_v17, %v191_v16  ;;  %vm198_vm1 = vweird.f32 %v1853_v17 }
  0xa6   :  { %vm199_vm3 = vmor %vm197_vm2, %vm198_vm1 }
  0xa7   :  { %v194_v19 = vsub.f32 1.0, %v193_v18 }
  0xa9   :  { %v195_v20 = vmul.f32 %v1853_v17, %v194_v19 }
  0xab   :  { %v196_v21 = vadd.f32 %v1853_v17, %v195_v20 }
  0xad   :  { %v200_v24 = vsel %vm199_vm3, %v1853_v17, %v196_v21 }
  0xae   :  { %v205_v27 = vsel %vm202_vm4, %v204_v25, %v200_v24 }
  0xaf   :  { %v208_v29 = vmul.f32 0.0, %v205_v27 }
 0x10c   :  { %v211_v26 = vpop.permute.xlu0 %210 }
 0x10d   :  { %v213_v28 = vmul.f32 %v211_v26, %v205_v27 }
 0x10f   :  { %215 = vrot.lane.b32.xlu0 %v213_v28, %s2120_s22 }
 0x181   :  { %v216_v30 = vpop.permute.xlu0 %215 }
 0x182   :  { %v2212_v31 = vadd.f32 %v216_v30, %v208_v29 }
 0x184   :  { %1854 = vtanh.f32 %v2212_v31 }
 0x18a   :  { %v1855_v32 = vpop.eup %1854 }
 0x18b   :  { %221 = vrot.lane.b32.xlu1 %v1855_v32, %s2120_s22 }
 0x1fd   :  { %v222_v41 = vpop.permute.xlu1 %221 }
 0x1fe   :  { %v224_v42 = vmul.f32 %v222_v41, %v205_v27 }
 0x200   :  { %226 = vrot.lane.b32.xlu1 %v224_v42, %s2121_s2 }
 0x272   :  { %v227_v45 = vpop.permute.xlu1 %226 }
 0x273   :  { %1789 = vmatmul.msk.f32.vlgmr.msrb.gmra.mxu2 %vm163_vm5, %v227_v45  ;;  %v289_v46 = vsel %vm163_vm5, %v227_v45, 0.0 }
 0x274   :  { %1791 = vmatmul.msk.f32.vlgmr.msra.gmra.mxu3 %vm293_vm6, %v289_v46  ;;  %635 = vmatpush.msrb.mxu2 %v2219_v33 }
 0x276   :  { %636 = vmatpush.msrb.mxu2 %v2224_v34 }
 0x278   :  { %637 = vmatpush.msrb.mxu2 %v2233_v36 }
 0x27a   :  { %638 = vmatpush.msrb.mxu2 %v2241_v37 }
 0x27c   :  { %639 = vmatpush.msrb.mxu2 %v2248_v38 }
 0x27e   :  { %640 = vmatpush.msrb.mxu2 %v2255_v39 }
 0x280   :  { %641 = vmatpush.msrb.mxu2 %v2262_v40 }
 0x282   :  { %642 = vmatpush.msrb.mxu2 %v2273_v43 }
 0x2f6   :  { %v247_v50 = vpop.f32.mrf.mxu2 }
 0x2f7   :  { %v250_v51 = vadd.f32 %v247_v50, %v121_v49  ;;  %v314_v53 = vpop.f32.mrf.mxu3  ;;  %v2325_v50 = vld [vmem:[#allocation4 + $0x38] sm:$0xff] }
 0x2f8   :  { %v315_v54 = vadd.f32 %v2302_v52, %v314_v53  ;;  %501 = vmatpush.msra.mxu1 %v2325_v50  ;;  %702 = vmatpush.msra.mxu3 %v2325_v50  ;;  %v2331_v53 = vld [vmem:[#allocation4 + $0x28] sm:$0xff] }
 0x2f9   :  { %1856 = vtanh.f32 %v250_v51  ;;  %v1790_v57 = vmul.f32 -1.442695, %v250_v51  ;;  %v2327_v51 = vld [vmem:[#allocation4 + $0x30] sm:$0xff]  ;;  %1104 = vmatpush.msrb.mxu0 %v2325_v50 }
 0x2fa   :  { %1858 = vtanh.f32 %v315_v54  ;;  %v1792_v58 = vmul.f32 -1.442695, %v315_v54  ;;  %502 = vmatpush.msra.mxu1 %v2327_v51  ;;  %703 = vmatpush.msra.mxu3 %v2327_v51  ;;  %v2336_v54 = vld [vmem:[#allocation4 + $0x20] sm:$0xff] }
 0x2fb   :  { %1860 = vpow2.f32 %v1790_v57  ;;  %1105 = vmatpush.msrb.mxu0 %v2327_v51  ;;  %v2351_v57 = vld [vmem:[#allocation4 + $0x8] sm:$0xff] }
 0x2fc   :  { %1862 = vpow2.f32 %v1792_v58  ;;  %503 = vmatpush.msra.mxu1 %v2331_v53  ;;  %704 = vmatpush.msra.mxu3 %v2331_v53 }
 0x2fd   :  { %1106 = vmatpush.msrb.mxu0 %v2331_v53 }
 0x2fe   :  { %504 = vmatpush.msra.mxu1 %v2336_v54  ;;  %705 = vmatpush.msra.mxu3 %v2336_v54 }
 0x2ff   :  { %v1857_v55 = vpop.eup %1856  ;;  %1107 = vmatpush.msrb.mxu0 %v2336_v54 }
 0x300   :  { %273 = vrot.lane.b32.xlu2 %v1857_v55, %s2120_s22  ;;  %v1859_v56 = vpop.eup %1858  ;;  %v2341_v55 = vld [vmem:[#allocation4 + $0x18] sm:$0xff] }
 0x301   :  { %v1861_v59 = vpop.eup %1860  ;;  %505 = vmatpush.msra.mxu1 %v2341_v55  ;;  %706 = vmatpush.msra.mxu3 %v2341_v55 }
 0x302   :  { %v254_v60 = vadd.f32 1.0, %v1861_v59  ;;  %v1863_v61 = vpop.eup %1862  ;;  %1108 = vmatpush.msrb.mxu0 %v2341_v55  ;;  %v2360_v59 = vld [vmem:[#allocation4] sm:$0xff] }
 0x303   :  { %v320_v62 = vadd.f32 1.0, %v1863_v61 }
 0x304   :  { %1864 = vrcp.f32 %v254_v60  ;;  %v266_v12 = vand.u32 2147483648, %v254_v60  ;;  %vm260_vm8 = vweird.f32 %v254_v60  ;;  %v264_v13 = vand.u32 2147483647, %v254_v60 }
 0x305   :  { %1866 = vrcp.f32 %v320_v62  ;;  %v332_v21 = vand.u32 2147483648, %v320_v62  ;;  %vm326_vm12 = vweird.f32 %v320_v62  ;;  %v330_v22 = vand.u32 2147483647, %v320_v62 }
 0x306   :  { %v267_v16 = vor.u32 1.1754944e-38, %v266_v12  ;;  %vm265_vm10 = vcmp.eq.f32.partialorder %v264_v13, 8.507059e+37  ;;  %v2405_v13 = vld [vmem:[%s2816_s7] ss:$0 sm:$0xff] }
 0x307   :  { %v333_v24 = vor.u32 1.1754944e-38, %v332_v21  ;;  %vm331_vm14 = vcmp.eq.f32.partialorder %v330_v22, 8.507059e+37 }
 0x308   :  { %339 = vrot.lane.b32.xlu2 %v1859_v56, %s2120_s22  ;;  %v2346_v56 = vld [vmem:[#allocation4 + $0x10] sm:$0xff] }
 0x309   :  { %506 = vmatpush.msra.mxu1 %v2346_v56  ;;  %707 = vmatpush.msra.mxu3 %v2346_v56 }
 0x30a   :  { %v1865_v63 = vpop.eup %1864  ;;  %1109 = vmatpush.msrb.mxu0 %v2346_v56 }
 0x30b   :  { %v256_v1 = vmul.f32 %v1865_v63, %v254_v60  ;;  %v1867_v4 = vpop.eup %1866  ;;  %vm261_vm7 = vweird.f32 %v1865_v63  ;;  %507 = vmatpush.msra.mxu1 %v2351_v57  ;;  %708 = vmatpush.msra.mxu3 %v2351_v57 }
 0x30c   :  { %v322_v9 = vmul.f32 %v1867_v4, %v320_v62  ;;  %vm262_vm9 = vmor %vm260_vm8, %vm261_vm7  ;;  %vm327_vm11 = vweird.f32 %v1867_v4  ;;  %1110 = vmatpush.msrb.mxu0 %v2351_v57 }
 0x30d   :  { %v257_v3 = vsub.f32 1.0, %v256_v1  ;;  %vm328_vm13 = vmor %vm326_vm12, %vm327_vm11  ;;  %709 = vmatpush.msra.mxu3 %v2360_v59  ;;  %508 = vmatpush.msra.mxu1 %v2360_v59 }
 0x30e   :  { %v323_v11 = vsub.f32 1.0, %v322_v9  ;;  %1111 = vmatpush.msrb.mxu0 %v2360_v59 }
 0x30f   :  { %v258_v7 = vmul.f32 %v1865_v63, %v257_v3 }
 0x310   :  { %v324_v15 = vmul.f32 %v1867_v4, %v323_v11  ;;  %1439 = vmatpush.msra.mxu0 %v2219_v33 }
 0x311   :  { %v259_v10 = vadd.f32 %v1865_v63, %v258_v7 }
 0x312   :  { %v325_v20 = vadd.f32 %v1867_v4, %v324_v15  ;;  %1440 = vmatpush.msra.mxu0 %v2224_v34 }
 0x313   :  { %v263_v14 = vsel %vm262_vm9, %v1865_v63, %v259_v10 }
 0x314   :  { %v268_v18 = vsel %vm265_vm10, %v267_v16, %v263_v14  ;;  %v329_v23 = vsel %vm328_vm13, %v1867_v4, %v325_v20  ;;  %1441 = vmatpush.msra.mxu0 %v2233_v36 }
 0x315   :  { %v334_v26 = vsel %vm331_vm14, %v333_v24, %v329_v23  ;;  %v271_v28 = vmul.f32 %v268_v18, %v2212_v31  ;;  %v63_v31 = vld [vmem:[%s2809_s0 + $0x10] sm:$0xff] }
 0x316   :  { %v337_v32 = vmul.f32 0.0, %v334_v26  ;;  %1782 = vmatmul.msk.f32.gmra.mxu0 %vm75_vm0, %v63_v31 }
 0x317   :  { %1442 = vmatpush.msra.mxu0 %v2241_v37 }
 0x319   :  { %1443 = vmatpush.msra.mxu0 %v2248_v38 }
 0x31b   :  { %1444 = vmatpush.msra.mxu0 %v2255_v39 }
 0x31d   :  { %1445 = vmatpush.msra.mxu0 %v2262_v40 }
 0x31f   :  { %1446 = vmatpush.msra.mxu0 %v2273_v43 }
 0x35a   :  { %v274_v17 = vpop.permute.xlu2 %273 }
 0x35b   :  { %v276_v19 = vmul.f32 %v274_v17, %v268_v18 }
 0x35d   :  { %278 = vrot.lane.b32.xlu0 %v276_v19, %s2120_s22 }
 0x362   :  { %v340_v25 = vpop.permute.xlu2 %339 }
 0x363   :  { %v342_v27 = vmul.f32 %v340_v25, %v334_v26 }
 0x365   :  { %344 = vrot.lane.b32.xlu1 %v342_v27, %s2120_s22 }
 0x393   :  { %v123_v1 = vpop.f32.mrf.mxu0 }
 0x394   :  { %v124_v3 = vadd.f32 %v2207_v8, %v123_v1 }
 0x3cf   :  { %v279_v29 = vpop.permute.xlu0 %278 }
 0x3d0   :  { %v2310_v30 = vadd.f32 %v279_v29, %v271_v28 }
 0x3d2   :  { %1868 = vtanh.f32 %v2310_v30 }
 0x3d7   :  { %v345_v35 = vpop.permute.xlu1 %344 }
 0x3d8   :  { %v1869_v41 = vpop.eup %1868  ;;  %v2313_v42 = vadd.f32 %v345_v35, %v337_v32 }
 0x3d9   :  { %284 = vrot.lane.b32.xlu2 %v1869_v41, %s2120_s22 }
 0x3da   :  { %1870 = vtanh.f32 %v2313_v42 }
 0x3e0   :  { %v1871_v44 = vpop.eup %1870 }
 0x3e1   :  { %350 = vrot.lane.b32.xlu0 %v1871_v44, %s2120_s22 }
 0x433   :  { %v285_v45 = vpop.permute.xlu2 %284 }
 0x434   :  { %v287_v46 = vmul.f32 %v285_v45, %v268_v18 }
 0x436   :  { %355 = vrot.lane.b32.xlu1 %v287_v46, %s2121_s2 }
 0x453   :  { %v351_v48 = vpop.permute.xlu0 %350 }
 0x454   :  { %v353_v49 = vmul.f32 %v351_v48, %v334_v26 }
 0x456   :  { %483 = vrot.lane.b32.xlu0 %v353_v49, %s2121_s2  ;;  %419 = vrot.lane.b32.xlu2 %v353_v49, %s2122_s24 }
 0x4a8   :  { %v356_v58 = vpop.permute.xlu1 %355 }
 0x4a9   :  { %1793 = vmatmul.msk.f32.vlgmr.msrb.gmra.mxu1 %vm163_vm5, %v356_v58 }
 0x4aa   :  { %773 = vmatpush.msrb.mxu1 %v2174_v0 }
 0x4ac   :  { %774 = vmatpush.msrb.mxu1 %v2179_v2 }
 0x4ae   :  { %775 = vmatpush.msrb.mxu1 %v2188_v5 }
 0x4b0   :  { %v420_v60 = vpop.permute.xlu2 %419  ;;  %776 = vmatpush.msrb.mxu1 %v2192_v6 }
 0x4b1   :  { %v422_v61 = vsel %vm163_vm5, %v356_v58, %v420_v60 }
 0x4b2   :  { %1795 = vmatmul.msk.f32.vlgmr.msra.gmra.mxu2 %vm293_vm6, %v422_v61 }
 0x4b3   :  { %903 = vmatpush.msra.mxu2 %v2325_v50 }
 0x4b5   :  { %904 = vmatpush.msra.mxu2 %v2327_v51 }
 0x4b7   :  { %905 = vmatpush.msra.mxu2 %v2331_v53 }
 0x4b9   :  { %906 = vmatpush.msra.mxu2 %v2336_v54 }
 0x4bb   :  { %907 = vmatpush.msra.mxu2 %v2341_v55 }
 0x4bd   :  { %908 = vmatpush.msra.mxu2 %v2346_v56 }
 0x4bf   :  { %909 = vmatpush.msra.mxu2 %v2351_v57 }
 0x4c1   :  { %910 = vmatpush.msra.mxu2 %v2360_v59 }
 0x4c8   :  { %v484_v62 = vpop.permute.xlu0 %483 }
 0x4c9   :  { %v486_v63 = vsel %vm163_vm5, %v484_v62, 0.0 }
 0x4ca   :  { %1797 = vmatmul.msk.f32.vlgmr.msra.gmra.mxu1 %vm293_vm6, %v486_v63 }
 0x4cb   :  { %836 = vmatpush.msra.mxu1 %v2219_v33 }
 0x4cd   :  { %837 = vmatpush.msra.mxu1 %v2224_v34 }
 0x4cf   :  { %838 = vmatpush.msra.mxu1 %v2233_v36 }
 0x4d1   :  { %839 = vmatpush.msra.mxu1 %v2241_v37 }
 0x4d3   :  { %840 = vmatpush.msra.mxu1 %v2248_v38 }
 0x4d5   :  { %841 = vmatpush.msra.mxu1 %v2255_v39 }
 0x4d7   :  { %842 = vmatpush.msra.mxu1 %v2262_v40 }
 0x4d9   :  { %843 = vmatpush.msra.mxu1 %v2273_v43 }
 0x526   :  { %v376_v4 = vpop.f32.mrf.mxu1 }
 0x527   :  { %v379_v7 = vadd.f32 %v376_v4, %v124_v3 }
 0x529   :  { %1872 = vtanh.f32 %v379_v7  ;;  %v1794_v18 = vmul.f32 -1.442695, %v379_v7 }
 0x52f   :  { %v1873_v9 = vpop.eup %1872 }
 0x530   :  { %402 = vrot.lane.b32.xlu1 %v1873_v9, %s2120_s22 }
 0x535   :  { %v443_v10 = vpop.f32.mrf.mxu2 }
 0x536   :  { %v444_v11 = vadd.f32 %v2302_v52, %v443_v10 }
 0x538   :  { %1874 = vtanh.f32 %v444_v11  ;;  %v1796_v17 = vmul.f32 -1.442695, %v444_v11 }
 0x53e   :  { %v1875_v12 = vpop.eup %1874 }
 0x53f   :  { %468 = vrot.lane.b32.xlu2 %v1875_v12, %s2120_s22 }
 0x547   :  { %v510_v14 = vpop.f32.mrf.mxu1 }
 0x548   :  { %v511_v15 = vadd.f32 %v2405_v13, %v510_v14 }
 0x54a   :  { %1876 = vtanh.f32 %v511_v15  ;;  %v1798_v44 = vmul.f32 -1.442695, %v511_v15 }
 0x54b   :  { %1878 = vpow2.f32 %v1796_v17 }
 0x54c   :  { %1880 = vpow2.f32 %v1794_v18 }
 0x550   :  { %v1877_v16 = vpop.eup %1876 }
 0x551   :  { %535 = vrot.lane.b32.xlu0 %v1877_v16, %s2120_s22  ;;  %v1879_v19 = vpop.eup %1878 }
 0x552   :  { %v449_v20 = vadd.f32 1.0, %v1879_v19  ;;  %v1881_v21 = vpop.eup %1880 }
 0x553   :  { %v383_v22 = vadd.f32 1.0, %v1881_v21 }
 0x554   :  { %1882 = vrcp.f32 %v449_v20  ;;  %v461_v32 = vand.u32 2147483648, %v449_v20  ;;  %vm455_vm1 = vweird.f32 %v449_v20  ;;  %v459_v41 = vand.u32 2147483647, %v449_v20 }
 0x555   :  { %1884 = vrcp.f32 %v383_v22  ;;  %v395_v61 = vand.u32 2147483648, %v383_v22  ;;  %vm389_vm7 = vweird.f32 %v383_v22  ;;  %v393_v62 = vand.u32 2147483647, %v383_v22 }
 0x556   :  { %v462_v46 = vor.u32 1.1754944e-38, %v461_v32  ;;  %vm460_vm3 = vcmp.eq.f32.partialorder %v459_v41, 8.507059e+37  ;;  %1886 = vpow2.f32 %v1798_v44 }
 0x557   :  { %v396_v3 = vor.u32 1.1754944e-38, %v395_v61  ;;  %vm394_vm9 = vcmp.eq.f32.partialorder %v393_v62, 8.507059e+37  ;;  %v64_v61 = vld [vmem:[%s2809_s0 + $0x18] sm:$0xff] }
 0x558   :  { %1783 = vmatmul.msk.f32.gmra.mxu0 %vm75_vm0, %v64_v61 }
 0x55a   :  { %v1883_v23 = vpop.eup %1882 }
 0x55b   :  { %v451_v24 = vmul.f32 %v1883_v23, %v449_v20  ;;  %v1885_v26 = vpop.eup %1884  ;;  %vm456_vm15 = vweird.f32 %v1883_v23 }
 0x55c   :  { %v385_v28 = vmul.f32 %v1885_v26, %v383_v22  ;;  %vm457_vm2 = vmor %vm455_vm1, %vm456_vm15  ;;  %vm390_vm4 = vweird.f32 %v1885_v26  ;;  %v1887_v1 = vpop.eup %1886 }
 0x55d   :  { %v452_v25 = vsub.f32 1.0, %v451_v24  ;;  %vm391_vm8 = vmor %vm389_vm7, %vm390_vm4  ;;  %v516_v9 = vadd.f32 1.0, %v1887_v1 }
 0x55e   :  { %v386_v35 = vsub.f32 1.0, %v385_v28 }
 0x55f   :  { %v453_v27 = vmul.f32 %v1883_v23, %v452_v25  ;;  %1888 = vrcp.f32 %v516_v9  ;;  %v528_v17 = vand.u32 2147483648, %v516_v9  ;;  %vm522_vm11 = vweird.f32 %v516_v9 }
 0x560   :  { %v387_v31 = vmul.f32 %v1885_v26, %v386_v35  ;;  %v526_v18 = vand.u32 2147483647, %v516_v9 }
 0x561   :  { %v454_v29 = vadd.f32 %v1883_v23, %v453_v27  ;;  %v529_v20 = vor.u32 1.1754944e-38, %v528_v17 }
 0x562   :  { %v388_v60 = vadd.f32 %v1885_v26, %v387_v31  ;;  %vm527_vm13 = vcmp.eq.f32.partialorder %v526_v18, 8.507059e+37 }
 0x563   :  { %v458_v45 = vsel %vm457_vm2, %v1883_v23, %v454_v29 }
 0x564   :  { %v463_v49 = vsel %vm460_vm3, %v462_v46, %v458_v45  ;;  %v392_v63 = vsel %vm391_vm8, %v1885_v26, %v388_v60 }
 0x565   :  { %v397_v7 = vsel %vm394_vm9, %v396_v3, %v392_v63  ;;  %v1889_v11 = vpop.eup %1888  ;;  %v466_v24 = vmul.f32 %v463_v49, %v2313_v42 }
 0x566   :  { %v518_v12 = vmul.f32 %v1889_v11, %v516_v9  ;;  %vm523_vm10 = vweird.f32 %v1889_v11  ;;  %v400_v28 = vmul.f32 %v397_v7, %v2310_v30 }
 0x567   :  { %vm524_vm12 = vmor %vm522_vm11, %vm523_vm10 }
 0x568   :  { %v519_v14 = vsub.f32 1.0, %v518_v12 }
 0x56a   :  { %v520_v15 = vmul.f32 %v1889_v11, %v519_v14 }
 0x56c   :  { %v521_v16 = vadd.f32 %v1889_v11, %v520_v15 }
 0x56e   :  { %v525_v19 = vsel %vm524_vm12, %v1889_v11, %v521_v16 }
 0x56f   :  { %v530_v22 = vsel %vm527_vm13, %v529_v20, %v525_v19 }
 0x570   :  { %v533_v41 = vmul.f32 0.0, %v530_v22 }
 0x599   :  { %v469_v48 = vpop.permute.xlu2 %468 }
 0x59a   :  { %v471_v58 = vmul.f32 %v469_v48, %v463_v49 }
 0x59c   :  { %473 = vrot.lane.b32.xlu2 %v471_v58, %s2120_s22 }
 0x5a2   :  { %v403_v4 = vpop.permute.xlu1 %402 }
 0x5a3   :  { %v405_v10 = vmul.f32 %v403_v4, %v397_v7 }
 0x5a5   :  { %407 = vrot.lane.b32.xlu1 %v405_v10, %s2120_s22 }
 0x5c3   :  { %v536_v21 = vpop.permute.xlu0 %535 }
 0x5c4   :  { %v538_v23 = vmul.f32 %v536_v21, %v530_v22 }
 0x5c6   :  { %540 = vrot.lane.b32.xlu0 %v538_v23, %s2120_s22 }
 0x5f6   :  { %v474_v25 = vpop.permute.xlu2 %473 }
 0x5f7   :  { %v2413_v26 = vadd.f32 %v474_v25, %v466_v24 }
 0x5f9   :  { %1890 = vtanh.f32 %v2413_v26 }
 0x5ff   :  { %v1891_v27 = vpop.eup %1890 }
 0x600   :  { %479 = vrot.lane.b32.xlu2 %v1891_v27, %s2120_s22 }
 0x617   :  { %v408_v29 = vpop.permute.xlu1 %407 }
 0x618   :  { %v2418_v32 = vadd.f32 %v408_v29, %v400_v28 }
 0x61a   :  { %1892 = vtanh.f32 %v2418_v32 }
 0x620   :  { %v1893_v35 = vpop.eup %1892 }
 0x621   :  { %413 = vrot.lane.b32.xlu1 %v1893_v35, %s2120_s22 }
 0x638   :  { %v541_v42 = vpop.permute.xlu0 %540 }
 0x639   :  { %v2422_v44 = vadd.f32 %v541_v42, %v533_v41 }
 0x63b   :  { %1894 = vtanh.f32 %v2422_v44 }
 0x641   :  { %v1895_v45 = vpop.eup %1894 }
 0x642   :  { %546 = vrot.lane.b32.xlu0 %v1895_v45, %s2120_s22 }
 0x65a   :  { %v480_v46 = vpop.permute.xlu2 %479 }
 0x65b   :  { %v482_v31 = vmul.f32 %v480_v46, %v463_v49 }
 0x65d   :  { %684 = vrot.lane.b32.xlu0 %v482_v31, %s2121_s2  ;;  %620 = vrot.lane.b32.xlu2 %v482_v31, %s2122_s24 }
 0x693   :  { %v414_v30 = vpop.permute.xlu1 %413 }
 0x694   :  { %v416_v48 = vmul.f32 %v414_v30, %v397_v7 }
 0x696   :  { %556 = vrot.lane.b32.xlu1 %v416_v48, %s2121_s2 }
 0x6b4   :  { %v547_v58 = vpop.permute.xlu0 %546 }
 0x6b5   :  { %v2429_v60 = vmul.f32 %v547_v58, %v530_v22 }
 0x6b7   :  { %687 = vrot.lane.b32.xlu1 %v2429_v60, %s2122_s24  ;;  %v621_v49 = vpop.permute.xlu2 %620 }
 0x708   :  { %v557_v62 = vpop.permute.xlu1 %556 }
 0x709   :  { %v623_v63 = vsel %vm163_vm5, %v557_v62, %v621_v49  ;;  %1799 = vmatmul.msk.f32.vlgmr.msrb.gmra.mxu3 %vm163_vm5, %v557_v62 }
 0x70a   :  { %1801 = vmatmul.msk.f32.vlgmr.msrb.gmra.mxu2 %vm293_vm6, %v623_v63  ;;  %974 = vmatpush.msrb.mxu3 %v2174_v0  ;;  %v685_v0 = vpop.permute.xlu0 %684 }
 0x70b   :  { %1238 = vmatpush.msrb.mxu2 %v2219_v33 }
 0x70c   :  { %975 = vmatpush.msrb.mxu3 %v2179_v2 }
 0x70d   :  { %1239 = vmatpush.msrb.mxu2 %v2224_v34 }
 0x70e   :  { %976 = vmatpush.msrb.mxu3 %v2188_v5  ;;  %v126_v5 = vpop.f32.mrf.mxu0 }
 0x70f   :  { %1240 = vmatpush.msrb.mxu2 %v2233_v36  ;;  %v127_v3 = vadd.f32 %v2207_v8, %v126_v5 }
 0x710   :  { %977 = vmatpush.msrb.mxu3 %v2192_v6 }
 0x711   :  { %1241 = vmatpush.msrb.mxu2 %v2241_v37 }
 0x713   :  { %1242 = vmatpush.msrb.mxu2 %v2248_v38 }
 0x715   :  { %1243 = vmatpush.msrb.mxu2 %v2255_v39 }
 0x717   :  { %1244 = vmatpush.msrb.mxu2 %v2262_v40 }
 0x719   :  { %1245 = vmatpush.msrb.mxu2 %v2273_v43 }
 0x729   :  { %v688_v2 = vpop.permute.xlu1 %687 }
 0x72a   :  { %v690_v1 = vsel %vm163_vm5, %v685_v0, %v688_v2 }
 0x72b   :  { %1803 = vmatmul.msk.f32.vlgmr.msra.gmra.mxu3 %vm293_vm6, %v690_v1 }
 0x72c   :  { %1037 = vmatpush.msra.mxu3 %v2219_v33 }
 0x72e   :  { %1038 = vmatpush.msra.mxu3 %v2224_v34 }
 0x730   :  { %1039 = vmatpush.msra.mxu3 %v2233_v36 }
 0x732   :  { %1040 = vmatpush.msra.mxu3 %v2241_v37 }
 0x734   :  { %1041 = vmatpush.msra.mxu3 %v2248_v38 }
 0x736   :  { %1042 = vmatpush.msra.mxu3 %v2255_v39 }
 0x738   :  { %1043 = vmatpush.msra.mxu3 %v2262_v40 }
 0x73a   :  { %1044 = vmatpush.msra.mxu3 %v2273_v43 }
 0x78c   :  { %v577_v4 = vpop.f32.mrf.mxu3 }
 0x78d   :  { %v580_v7 = vadd.f32 %v577_v4, %v127_v3  ;;  %v644_v33 = vpop.f32.mrf.mxu2 }
 0x78e   :  { %v645_v34 = vadd.f32 %v2302_v52, %v644_v33 }
 0x78f   :  { %1896 = vtanh.f32 %v580_v7  ;;  %v1800_v8 = vmul.f32 -1.442695, %v580_v7 }
 0x790   :  { %1898 = vtanh.f32 %v645_v34  ;;  %v1802_v11 = vmul.f32 -1.442695, %v645_v34 }
 0x795   :  { %v1897_v36 = vpop.eup %1896 }
 0x796   :  { %v1899_v37 = vpop.eup %1898  ;;  %603 = vrot.lane.b32.xlu2 %v1897_v36, %s2120_s22 }
 0x797   :  { %669 = vrot.lane.b32.xlu0 %v1899_v37, %s2120_s22 }
 0x7ae   :  { %v711_v38 = vpop.f32.mrf.mxu3 }
 0x7af   :  { %v712_v39 = vadd.f32 %v2405_v13, %v711_v38 }
 0x7b1   :  { %1900 = vtanh.f32 %v712_v39  ;;  %v1804_v35 = vmul.f32 -1.442695, %v712_v39 }
 0x7b2   :  { %1902 = vpow2.f32 %v1800_v8 }
 0x7b7   :  { %v1901_v40 = vpop.eup %1900 }
 0x7b8   :  { %736 = vrot.lane.b32.xlu1 %v1901_v40, %s2120_s22  ;;  %v1903_v43 = vpop.eup %1902 }
 0x7b9   :  { %v584_v9 = vadd.f32 1.0, %v1903_v43 }
 0x7bb   :  { %1904 = vrcp.f32 %v584_v9  ;;  %v596_v19 = vand.u32 2147483648, %v584_v9  ;;  %vm590_vm15 = vweird.f32 %v584_v9  ;;  %v594_v20 = vand.u32 2147483647, %v584_v9 }
 0x7bc   :  { %1906 = vpow2.f32 %v1802_v11 }
 0x7bd   :  { %v597_v22 = vor.u32 1.1754944e-38, %v596_v19  ;;  %vm595_vm2 = vcmp.eq.f32.partialorder %v594_v20, 8.507059e+37  ;;  %v2494_v20 = vld [vmem:[#allocation2 + $0x18] sm:$0xff] }
 0x7c1   :  { %v1905_v10 = vpop.eup %1904 }
 0x7c2   :  { %v586_v12 = vmul.f32 %v1905_v10, %v584_v9  ;;  %v1907_v16 = vpop.eup %1906  ;;  %vm591_vm14 = vweird.f32 %v1905_v10 }
 0x7c3   :  { %v650_v17 = vadd.f32 1.0, %v1907_v16  ;;  %vm592_vm1 = vmor %vm590_vm15, %vm591_vm14 }
 0x7c4   :  { %v587_v14 = vsub.f32 1.0, %v586_v12 }
 0x7c5   :  { %1908 = vrcp.f32 %v650_v17  ;;  %v662_v45 = vand.u32 2147483648, %v650_v17  ;;  %vm656_vm4 = vweird.f32 %v650_v17  ;;  %v660_v46 = vand.u32 2147483647, %v650_v17 }
 0x7c6   :  { %v588_v15 = vmul.f32 %v1905_v10, %v587_v14  ;;  %1910 = vpow2.f32 %v1804_v35 }
 0x7c7   :  { %v663_v48 = vor.u32 1.1754944e-38, %v662_v45  ;;  %vm661_vm8 = vcmp.eq.f32.partialorder %v660_v46, 8.507059e+37 }
 0x7c8   :  { %v589_v18 = vadd.f32 %v1905_v10, %v588_v15 }
 0x7ca   :  { %v593_v21 = vsel %vm592_vm1, %v1905_v10, %v589_v18 }
 0x7cb   :  { %v598_v23 = vsel %vm595_vm2, %v597_v22, %v593_v21  ;;  %v1909_v27 = vpop.eup %1908  ;;  %v2497_v21 = vld [vmem:[#allocation2 + $0x10] sm:$0xff]  ;;  %v2500_v22 = vld [vmem:[#allocation2 + $0x8] sm:$0xff] }
 0x7cc   :  { %v652_v28 = vmul.f32 %v1909_v27, %v650_v17  ;;  %vm657_vm3 = vweird.f32 %v1909_v27  ;;  %v1911_v30 = vpop.eup %1910  ;;  %v601_v38 = vmul.f32 %v598_v23, %v2418_v32  ;;  %v65_v17 = vld [vmem:[%s2809_s0 + $0x20] sm:$0xff] }
 0x7cd   :  { %vm658_vm7 = vmor %vm656_vm4, %vm657_vm3  ;;  %v717_v49 = vadd.f32 1.0, %v1911_v30  ;;  %1784 = vmatmul.msk.f32.gmra.mxu0 %vm75_vm0, %v65_v17 }
 0x7ce   :  { %v653_v29 = vsub.f32 1.0, %v652_v28 }
 0x7cf   :  { %1912 = vrcp.f32 %v717_v49  ;;  %v729_v3 = vand.u32 2147483648, %v717_v49  ;;  %vm723_vm10 = vweird.f32 %v717_v49  ;;  %v727_v4 = vand.u32 2147483647, %v717_v49 }
 0x7d0   :  { %v654_v41 = vmul.f32 %v1909_v27, %v653_v29 }
 0x7d1   :  { %v730_v33 = vor.u32 1.1754944e-38, %v729_v3  ;;  %vm728_vm12 = vcmp.eq.f32.partialorder %v727_v4, 8.507059e+37 }
 0x7d2   :  { %v655_v42 = vadd.f32 %v1909_v27, %v654_v41  ;;  %v2530_v41 = vld [vmem:[%s2812_s3] ss:$0 sm:$0xff] }
 0x7d4   :  { %v659_v31 = vsel %vm658_vm7, %v1909_v27, %v655_v42 }
 0x7d5   :  { %v664_v61 = vsel %vm661_vm8, %v663_v48, %v659_v31  ;;  %v1913_v63 = vpop.eup %1912 }
 0x7d6   :  { %v719_v0 = vmul.f32 %v1913_v63, %v717_v49  ;;  %vm724_vm9 = vweird.f32 %v1913_v63  ;;  %v667_v43 = vmul.f32 %v664_v61, %v2413_v26 }
 0x7d7   :  { %vm725_vm11 = vmor %vm723_vm10, %vm724_vm9 }
 0x7d8   :  { %v720_v2 = vsub.f32 1.0, %v719_v0 }
 0x7da   :  { %v721_v1 = vmul.f32 %v1913_v63, %v720_v2 }
 0x7dc   :  { %v722_v5 = vadd.f32 %v1913_v63, %v721_v1 }
 0x7de   :  { %v726_v7 = vsel %vm725_vm11, %v1913_v63, %v722_v5 }
 0x7df   :  { %v731_v36 = vsel %vm728_vm12, %v730_v33, %v726_v7 }
 0x7e0   :  { %v734_v32 = vmul.f32 %v731_v36, %v2422_v44 }
 0x7f0   :  { %v604_v24 = vpop.permute.xlu2 %603 }
 0x7f1   :  { %v606_v25 = vmul.f32 %v604_v24, %v598_v23 }
 0x7f3   :  { %608 = vrot.lane.b32.xlu2 %v606_v25, %s2120_s22 }
 0x809   :  { %v670_v58 = vpop.permute.xlu0 %669 }
 0x80a   :  { %v672_v62 = vmul.f32 %v670_v58, %v664_v61 }
 0x80c   :  { %674 = vrot.lane.b32.xlu0 %v672_v62, %s2120_s22 }
 0x82a   :  { %v737_v34 = vpop.permute.xlu1 %736 }
 0x82b   :  { %v739_v37 = vmul.f32 %v737_v34, %v731_v36 }
 0x82d   :  { %741 = vrot.lane.b32.xlu1 %v739_v37, %s2120_s22 }
 0x84a   :  { %v129_v35 = vpop.f32.mrf.mxu0 }
 0x84b   :  { %v130_v42 = vadd.f32 %v2530_v41, %v129_v35 }
 0x84d   :  { %v609_v39 = vpop.permute.xlu2 %608 }
 0x84e   :  { %v2472_v40 = vadd.f32 %v609_v39, %v601_v38 }
 0x850   :  { %1914 = vtanh.f32 %v2472_v40 }
 0x856   :  { %v1915_v8 = vpop.eup %1914 }
 0x857   :  { %614 = vrot.lane.b32.xlu2 %v1915_v8, %s2120_s22 }
 0x87e   :  { %v675_v9 = vpop.permute.xlu0 %674 }
 0x87f   :  { %v2477_v10 = vadd.f32 %v675_v9, %v667_v43 }
 0x881   :  { %1916 = vtanh.f32 %v2477_v10 }
 0x887   :  { %v1917_v11 = vpop.eup %1916 }
 0x888   :  { %680 = vrot.lane.b32.xlu0 %v1917_v11, %s2120_s22 }
 0x89f   :  { %v742_v12 = vpop.permute.xlu1 %741 }
 0x8a0   :  { %v2482_v14 = vadd.f32 %v742_v12, %v734_v32 }
 0x8a2   :  { %1918 = vtanh.f32 %v2482_v14 }
 0x8a8   :  { %v1919_v15 = vpop.eup %1918 }
 0x8a9   :  { %747 = vrot.lane.b32.xlu1 %v1919_v15, %s2120_s22 }
 0x8b1   :  { %v615_v16 = vpop.permute.xlu2 %614 }
 0x8b2   :  { %v617_v26 = vmul.f32 %v615_v16, %v598_v23 }
 0x8b4   :  { %757 = vrot.lane.b32.xlu2 %v617_v26, %s2121_s2 }
 0x8fa   :  { %v681_v18 = vpop.permute.xlu0 %680 }
 0x8fb   :  { %v683_v44 = vmul.f32 %v681_v18, %v664_v61 }
 0x8fd   :  { %885 = vrot.lane.b32.xlu1 %v683_v44, %s2121_s2  ;;  %821 = vrot.lane.b32.xlu0 %v683_v44, %s2122_s24 }
 0x90e   :  { %v758_v19 = vpop.permute.xlu2 %757 }
 0x90f   :  { %1805 = vmatmul.msk.f32.vlgmr.msrb.gmra.mxu1 %vm163_vm5, %v758_v19 }
 0x910   :  { %1175 = vmatpush.msrb.mxu1 %v2494_v20 }
 0x912   :  { %1176 = vmatpush.msrb.mxu1 %v2497_v21 }
 0x914   :  { %1177 = vmatpush.msrb.mxu1 %v2500_v22 }
 0x916   :  { %1178 = vmatpush.msrb.mxu1 %v2192_v6 }
 0x91b   :  { %v748_v23 = vpop.permute.xlu1 %747 }
 0x91c   :  { %v2504_v24 = vmul.f32 %v748_v23, %v731_v36 }
 0x91e   :  { %888 = vrot.lane.b32.xlu2 %v2504_v24, %s2122_s24 }
 0x96f   :  { %v822_v25 = vpop.permute.xlu0 %821  ;;  %v886_v28 = vpop.permute.xlu1 %885 }
 0x970   :  { %v824_v27 = vsel %vm163_vm5, %v758_v19, %v822_v25 }
 0x971   :  { %1807 = vmatmul.msk.f32.vlgmr.msra.gmra.mxu1 %vm293_vm6, %v824_v27 }
 0x972   :  { %1305 = vmatpush.msra.mxu1 %v2325_v50 }
 0x974   :  { %1306 = vmatpush.msra.mxu1 %v2327_v51 }
 0x976   :  { %1307 = vmatpush.msra.mxu1 %v2331_v53 }
 0x978   :  { %v889_v29 = vpop.permute.xlu2 %888  ;;  %1308 = vmatpush.msra.mxu1 %v2336_v54 }
 0x979   :  { %v891_v6 = vsel %vm163_vm5, %v886_v28, %v889_v29 }
 0x97a   :  { %1809 = vmatmul.msk.f32.vlgmr.msra.gmra.mxu2 %vm293_vm6, %v891_v6  ;;  %1309 = vmatpush.msra.mxu1 %v2341_v55 }
 0x97b   :  { %1506 = vmatpush.msra.mxu2 %v2325_v50 }
 0x97c   :  { %1310 = vmatpush.msra.mxu1 %v2346_v56 }
 0x97d   :  { %1507 = vmatpush.msra.mxu2 %v2327_v51 }
 0x97e   :  { %1311 = vmatpush.msra.mxu1 %v2351_v57 }
 0x97f   :  { %1508 = vmatpush.msra.mxu2 %v2331_v53 }
 0x980   :  { %1312 = vmatpush.msra.mxu1 %v2360_v59 }
 0x981   :  { %1509 = vmatpush.msra.mxu2 %v2336_v54 }
 0x983   :  { %1510 = vmatpush.msra.mxu2 %v2341_v55 }
 0x985   :  { %1511 = vmatpush.msra.mxu2 %v2346_v56 }
 0x987   :  { %1512 = vmatpush.msra.mxu2 %v2351_v57 }
 0x989   :  { %1513 = vmatpush.msra.mxu2 %v2360_v59 }
 0x98c   :  { %v778_v45 = vpop.f32.mrf.mxu1 }
 0x98d   :  { %v781_v46 = vadd.f32 %v778_v45, %v130_v42 }
 0x98f   :  { %1920 = vtanh.f32 %v781_v46  ;;  %v1806_v30 = vmul.f32 -1.442695, %v781_v46 }
 0x991   :  { %1922 = vpow2.f32 %v1806_v30 }
 0x995   :  { %v1921_v31 = vpop.eup %1920 }
 0x996   :  { %804 = vrot.lane.b32.xlu0 %v1921_v31, %s2120_s22 }
 0x997   :  { %v1923_v48 = vpop.eup %1922 }
 0x998   :  { %v785_v58 = vadd.f32 1.0, %v1923_v48 }
 0x99a   :  { %1924 = vrcp.f32 %v785_v58  ;;  %v797_v7 = vand.u32 2147483648, %v785_v58  ;;  %vm791_vm14 = vweird.f32 %v785_v58  ;;  %v795_v33 = vand.u32 2147483647, %v785_v58 }
 0x99c   :  { %v798_v36 = vor.u32 1.1754944e-38, %v797_v7  ;;  %vm796_vm1 = vcmp.eq.f32.partialorder %v795_v33, 8.507059e+37 }
 0x9a0   :  { %v1925_v62 = vpop.eup %1924 }
 0x9a1   :  { %v787_v63 = vmul.f32 %v1925_v62, %v785_v58  ;;  %vm792_vm13 = vweird.f32 %v1925_v62 }
 0x9a2   :  { %vm793_vm15 = vmor %vm791_vm14, %vm792_vm13 }
 0x9a3   :  { %v788_v2 = vsub.f32 1.0, %v787_v63 }
 0x9a5   :  { %v789_v5 = vmul.f32 %v1925_v62, %v788_v2 }
 0x9a7   :  { %v790_v4 = vadd.f32 %v1925_v62, %v789_v5 }
 0x9a9   :  { %v794_v34 = vsel %vm793_vm15, %v1925_v62, %v790_v4 }
 0x9aa   :  { %v2539_v38 = vsel %vm796_vm1, %v798_v36, %v794_v34 }
 0x9ab   :  { %v802_v63 = vmul.f32 %v2539_v38, %v2472_v40 }
 0x9ee   :  { %v845_v61 = vpop.f32.mrf.mxu1 }
 0x9ef   :  { %v846_v49 = vadd.f32 %v2302_v52, %v845_v61 }
 0x9f1   :  { %1926 = vtanh.f32 %v846_v49  ;;  %v1808_v43 = vmul.f32 -1.442695, %v846_v49 }
 0x9f7   :  { %v1927_v0 = vpop.eup %1926 }
 0x9f8   :  { %870 = vrot.lane.b32.xlu1 %v1927_v0, %s2120_s22 }
 0x9fd   :  { %v912_v1 = vpop.f32.mrf.mxu2 }
 0x9fe   :  { %v913_v3 = vadd.f32 %v2405_v13, %v912_v1 }
 0xa00   :  { %1928 = vtanh.f32 %v913_v3  ;;  %v1810_v8 = vmul.f32 -1.442695, %v913_v3 }
 0xa02   :  { %1930 = vpow2.f32 %v1810_v8 }
 0xa03   :  { %1932 = vpow2.f32 %v1808_v43 }
 0xa06   :  { %v1929_v52 = vpop.eup %1928 }
 0xa07   :  { %937 = vrot.lane.b32.xlu2 %v1929_v52, %s2120_s22 }
 0xa08   :  { %v805_v37 = vpop.permute.xlu0 %804  ;;  %v1931_v9 = vpop.eup %1930 }
 0xa09   :  { %v807_v39 = vmul.f32 %v805_v37, %v2539_v38  ;;  %v918_v11 = vadd.f32 1.0, %v1931_v9  ;;  %v1933_v32 = vpop.eup %1932  ;;  %v2044_v9 = vld [vmem:[#allocation2] sm:$0xff] }
 0xa0a   :  { %v851_v12 = vadd.f32 1.0, %v1933_v32 }
 0xa0b   :  { %809 = vrot.lane.b32.xlu0 %v807_v39, %s2120_s22  ;;  %1934 = vrcp.f32 %v918_v11  ;;  %v930_v23 = vand.u32 2147483648, %v918_v11  ;;  %vm924_vm3 = vweird.f32 %v918_v11  ;;  %v928_v27 = vand.u32 2147483647, %v918_v11 }
 0xa0c   :  { %1936 = vrcp.f32 %v851_v12  ;;  %v863_v31 = vand.u32 2147483648, %v851_v12  ;;  %vm857_vm9 = vweird.f32 %v851_v12  ;;  %v861_v30 = vand.u32 2147483647, %v851_v12 }
 0xa0d   :  { %v931_v29 = vor.u32 1.1754944e-38, %v930_v23  ;;  %vm929_vm7 = vcmp.eq.f32.partialorder %v928_v27, 8.507059e+37 }
 0xa0e   :  { %v864_v58 = vor.u32 1.1754944e-38, %v863_v31  ;;  %vm862_vm11 = vcmp.eq.f32.partialorder %v861_v30, 8.507059e+37 }
 0xa11   :  { %v1935_v15 = vpop.eup %1934 }
 0xa12   :  { %v920_v16 = vmul.f32 %v1935_v15, %v918_v11  ;;  %v1937_v17 = vpop.eup %1936  ;;  %vm925_vm2 = vweird.f32 %v1935_v15  ;;  %v67_v11 = vld [vmem:[%s2809_s0 + $0x30] sm:$0xff] }
 0xa13   :  { %v853_v44 = vmul.f32 %v1937_v17, %v851_v12  ;;  %vm926_vm4 = vmor %vm924_vm3, %vm925_vm2  ;;  %vm858_vm8 = vweird.f32 %v1937_v17 }
 0xa14   :  { %v921_v26 = vsub.f32 1.0, %v920_v16  ;;  %vm859_vm10 = vmor %vm857_vm9, %vm858_vm8 }
 0xa15   :  { %v854_v25 = vsub.f32 1.0, %v853_v44 }
 0xa16   :  { %v922_v18 = vmul.f32 %v1935_v15, %v921_v26 }
 0xa17   :  { %v855_v6 = vmul.f32 %v1937_v17, %v854_v25 }
 0xa18   :  { %v923_v19 = vadd.f32 %v1935_v15, %v922_v18 }
 0xa19   :  { %v856_v46 = vadd.f32 %v1937_v17, %v855_v6 }
 0xa1a   :  { %v927_v28 = vsel %vm926_vm4, %v1935_v15, %v923_v19 }
 0xa1b   :  { %v932_v42 = vsel %vm929_vm7, %v931_v29, %v927_v28  ;;  %v860_v48 = vsel %vm859_vm10, %v1937_v17, %v856_v46 }
 0xa1c   :  { %v865_v49 = vsel %vm862_vm11, %v864_v58, %v860_v48  ;;  %v935_v5 = vmul.f32 %v932_v42, %v2482_v14 }
 0xa1d   :  { %v868_v40 = vmul.f32 %v865_v49, %v2477_v10  ;;  %v66_v10 = vld [vmem:[%s2809_s0 + $0x28] sm:$0xff] }
 0xa1e   :  { %1785 = vmatmul.msk.f32.gmra.mxu0 %vm75_vm0, %v66_v10 }
 0xa26   :  { %1786 = vmatmul.msk.f32.gmra.mxu0 %vm75_vm0, %v67_v11 }
 0xa61   :  { %v938_v35 = vpop.permute.xlu2 %937 }
 0xa62   :  { %v940_v45 = vmul.f32 %v938_v35, %v932_v42  ;;  %v2626_v35 = vld [vmem:[%s2814_s5] ss:$0 sm:$0xff] }
 0xa64   :  { %942 = vrot.lane.b32.xlu2 %v940_v45, %s2120_s22 }
 0xa6a   :  { %v871_v61 = vpop.permute.xlu1 %870 }
 0xa6b   :  { %v873_v62 = vmul.f32 %v871_v61, %v865_v49 }
 0xa6d   :  { %875 = vrot.lane.b32.xlu1 %v873_v62, %s2120_s22 }
 0xa7d   :  { %v810_v0 = vpop.permute.xlu0 %809 }
 0xa7e   :  { %v2547_v2 = vadd.f32 %v810_v0, %v802_v63 }
 0xa80   :  { %1938 = vtanh.f32 %v2547_v2 }
 0xa86   :  { %v1939_v1 = vpop.eup %1938 }
 0xa87   :  { %815 = vrot.lane.b32.xlu0 %v1939_v1, %s2120_s22 }
 0xabe   :  { %v943_v3 = vpop.permute.xlu2 %942 }
 0xabf   :  { %v2552_v4 = vadd.f32 %v943_v3, %v935_v5 }
 0xac1   :  { %1940 = vtanh.f32 %v2552_v4 }
 0xac7   :  { %v1941_v7 = vpop.eup %1940 }
 0xac8   :  { %948 = vrot.lane.b32.xlu2 %v1941_v7, %s2120_s22 }
 0xadf   :  { %v876_v33 = vpop.permute.xlu1 %875 }
 0xae0   :  { %v2557_v34 = vadd.f32 %v876_v33, %v868_v40 }
 0xae2   :  { %1942 = vtanh.f32 %v2557_v34 }
 0xae8   :  { %v1943_v52 = vpop.eup %1942 }
 0xae9   :  { %881 = vrot.lane.b32.xlu1 %v1943_v52, %s2120_s22 }
 0xaf9   :  { %v816_v36 = vpop.permute.xlu0 %815 }
 0xafa   :  { %v818_v14 = vmul.f32 %v816_v36, %v2539_v38 }
 0xafc   :  { %958 = vrot.lane.b32.xlu0 %v818_v14, %s2121_s2 }
 0xb22   :  { %v949_v37 = vpop.permute.xlu2 %948 }
 0xb23   :  { %v2563_v39 = vmul.f32 %v949_v37, %v932_v42 }
 0xb25   :  { %1089 = vrot.lane.b32.xlu0 %v2563_v39, %s2122_s24 }
 0xb5b   :  { %v882_v8 = vpop.permute.xlu1 %881 }
 0xb5c   :  { %v884_v43 = vmul.f32 %v882_v8, %v865_v49 }
 0xb5e   :  { %1022 = vrot.lane.b32.xlu1 %v884_v43, %s2122_s24  ;;  %1086 = vrot.lane.b32.xlu2 %v884_v43, %s2121_s2 }
 0xb6e   :  { %v959_v38 = vpop.permute.xlu0 %958 }
 0xb6f   :  { %1811 = vmatmul.msk.f32.vlgmr.msrb.gmra.mxu3 %vm163_vm5, %v959_v38 }
 0xb70   :  { %1376 = vmatpush.msrb.mxu3 %v2494_v20 }
 0xb72   :  { %1377 = vmatpush.msrb.mxu3 %v2497_v21 }
 0xb74   :  { %1378 = vmatpush.msrb.mxu3 %v2500_v22  ;;  %v132_v22 = vpop.f32.mrf.mxu0 }
 0xb75   :  { %v133_v16 = vadd.f32 %v2530_v41, %v132_v22 }
 0xb76   :  { %1379 = vmatpush.msrb.mxu3 %v2044_v9 }
 0xb7c   :  { %v2619_v44 = vpop.f32.mrf.mxu0 }
 0xb97   :  { %v1090_v32 = vpop.permute.xlu0 %1089 }
 0xbb8   :  { %v1087_v12 = vpop.permute.xlu2 %1086 }
 0xbb9   :  { %v1092_v15 = vsel %vm163_vm5, %v1087_v12, %v1090_v32 }
 0xbba   :  { %1815 = vmatmul.msk.f32.vlgmr.msrb.gmra.mxu0 %vm293_vm6, %v1092_v15 }
 0xbbb   :  { %1720 = vmatpush.msrb.mxu0 %v2325_v50  ;;  %v2045_v50 = vld [vmem:[%s2813_s4 + $0x38] sm:$0xff] }
 0xbbd   :  { %1721 = vmatpush.msrb.mxu0 %v2327_v51  ;;  %v2046_v51 = vld [vmem:[%s2813_s4 + $0x30] sm:$0xff] }
 0xbbf   :  { %1722 = vmatpush.msrb.mxu0 %v2331_v53  ;;  %v2047_v53 = vld [vmem:[%s2813_s4 + $0x28] sm:$0xff] }
 0xbc1   :  { %1723 = vmatpush.msrb.mxu0 %v2336_v54  ;;  %v2048_v54 = vld [vmem:[%s2813_s4 + $0x20] sm:$0xff] }
 0xbc3   :  { %1724 = vmatpush.msrb.mxu0 %v2341_v55  ;;  %v2049_v55 = vld [vmem:[%s2813_s4 + $0x18] sm:$0xff] }
 0xbc5   :  { %1725 = vmatpush.msrb.mxu0 %v2346_v56  ;;  %v2050_v56 = vld [vmem:[%s2813_s4 + $0x10] sm:$0xff] }
 0xbc7   :  { %1726 = vmatpush.msrb.mxu0 %v2351_v57  ;;  %v2051_v57 = vld [vmem:[%s2813_s4 + $0x8] sm:$0xff] }
 0xbc9   :  { %1727 = vmatpush.msrb.mxu0 %v2360_v59  ;;  %v2052_v59 = vld [vmem:[%s2813_s4] sm:$0xff] }
 0xbd0   :  { %v1023_v20 = vpop.permute.xlu1 %1022 }
 0xbd1   :  { %v1025_v21 = vsel %vm163_vm5, %v959_v38, %v1023_v20 }
 0xbd2   :  { %1813 = vmatmul.msk.f32.vlgmr.msra.gmra.mxu3 %vm293_vm6, %v1025_v21 }
 0xbd3   :  { %1580 = vmatpush.msra.mxu3 %v2045_v50 }
 0xbd5   :  { %1581 = vmatpush.msra.mxu3 %v2046_v51 }
 0xbd7   :  { %1582 = vmatpush.msra.mxu3 %v2047_v53 }
 0xbd9   :  { %1583 = vmatpush.msra.mxu3 %v2048_v54 }
 0xbdb   :  { %1584 = vmatpush.msra.mxu3 %v2049_v55 }
 0xbdd   :  { %1585 = vmatpush.msra.mxu3 %v2050_v56 }
 0xbdf   :  { %1586 = vmatpush.msra.mxu3 %v2051_v57 }
 0xbe1   :  { %1587 = vmatpush.msra.mxu3 %v2052_v59 }
 0xbf2   :  { %v979_v26 = vpop.f32.mrf.mxu3 }
 0xbf3   :  { %v982_v17 = vadd.f32 %v979_v26, %v133_v16 }
 0xbf5   :  { %1944 = vtanh.f32 %v982_v17  ;;  %v1812_v27 = vmul.f32 -1.442695, %v982_v17 }
 0xbfb   :  { %v1945_v18 = vpop.eup %1944 }
 0xbfc   :  { %1005 = vrot.lane.b32.xlu1 %v1945_v18, %s2120_s22 }
 0xc37   :  { %v1113_v19 = vpop.f32.mrf.mxu0 }
 0xc38   :  { %v1114_v23 = vadd.f32 %v2405_v13, %v1113_v19 }
 0xc3a   :  { %1946 = vtanh.f32 %v1114_v23  ;;  %v1816_v5 = vmul.f32 -1.442695, %v1114_v23 }
 0xc3b   :  { %1948 = vpow2.f32 %v1812_v27 }
 0xc40   :  { %v1947_v25 = vpop.eup %1946 }
 0xc41   :  { %1138 = vrot.lane.b32.xlu0 %v1947_v25, %s2120_s22  ;;  %v1949_v28 = vpop.eup %1948 }
 0xc42   :  { %v986_v29 = vadd.f32 1.0, %v1949_v28 }
 0xc44   :  { %1950 = vrcp.f32 %v986_v29  ;;  %v998_v58 = vand.u32 2147483648, %v986_v29  ;;  %vm992_vm12 = vweird.f32 %v986_v29  ;;  %v996_v61 = vand.u32 2147483647, %v986_v29 }
 0xc46   :  { %v999_v62 = vor.u32 1.1754944e-38, %v998_v58  ;;  %vm997_vm14 = vcmp.eq.f32.partialorder %v996_v61, 8.507059e+37 }
 0xc4a   :  { %v1951_v45 = vpop.eup %1950 }
 0xc4b   :  { %v988_v13 = vmul.f32 %v1951_v45, %v986_v29  ;;  %vm993_vm0 = vweird.f32 %v1951_v45 }
 0xc4c   :  { %vm994_vm13 = vmor %vm992_vm12, %vm993_vm0 }
 0xc4d   :  { %v989_v31 = vsub.f32 1.0, %v988_v13 }
 0xc4f   :  { %v990_v30 = vmul.f32 %v1951_v45, %v989_v31 }
 0xc51   :  { %v991_v48 = vadd.f32 %v1951_v45, %v990_v30 }
 0xc53   :  { %v995_v49 = vsel %vm994_vm13, %v1951_v45, %v991_v48  ;;  %v2054_v48 = vld [vmem:[#allocation4 + $0x38] sm:$0xff] }
 0xc54   :  { %v2630_v63 = vsel %vm997_vm14, %v999_v62, %v995_v49  ;;  %v2055_v49 = vld [vmem:[#allocation4 + $0x30] sm:$0xff]  ;;  %v2056_v62 = vld [vmem:[#allocation4 + $0x28] sm:$0xff] }
 0xc55   :  { %v1046_v6 = vpop.f32.mrf.mxu3  ;;  %v1003_v26 = vmul.f32 %v2630_v63, %v2547_v2 }
 0xc56   :  { %v1047_v42 = vadd.f32 %v2626_v35, %v1046_v6 }
 0xc58   :  { %1952 = vtanh.f32 %v1047_v42  ;;  %v1814_v3 = vmul.f32 -1.442695, %v1047_v42 }
 0xc59   :  { %1954 = vpow2.f32 %v1816_v5  ;;  %v2060_v5 = vld [vmem:[#allocation4 + $0x8] sm:$0xff] }
 0xc5a   :  { %1956 = vpow2.f32 %v1814_v3  ;;  %v2061_v3 = vld [vmem:[#allocation4] sm:$0xff] }
 0xc5e   :  { %v1953_v46 = vpop.eup %1952 }
 0xc5f   :  { %1071 = vrot.lane.b32.xlu2 %v1953_v46, %s2120_s22  ;;  %v1955_v7 = vpop.eup %1954 }
 0xc60   :  { %v1119_v40 = vadd.f32 1.0, %v1955_v7  ;;  %v1957_v33 = vpop.eup %1956 }
 0xc61   :  { %v1052_v52 = vadd.f32 1.0, %v1957_v33 }
 0xc62   :  { %1958 = vrcp.f32 %v1119_v40  ;;  %v1131_v11 = vand.u32 2147483648, %v1119_v40  ;;  %vm1125_vm1 = vweird.f32 %v1119_v40  ;;  %v1129_v32 = vand.u32 2147483647, %v1119_v40 }
 0xc63   :  { %1960 = vrcp.f32 %v1052_v52  ;;  %v1064_v53 = vand.u32 2147483648, %v1052_v52  ;;  %vm1058_vm7 = vweird.f32 %v1052_v52  ;;  %v1062_v55 = vand.u32 2147483647, %v1052_v52 }
 0xc64   :  { %v1132_v20 = vor.u32 1.1754944e-38, %v1131_v11  ;;  %vm1130_vm3 = vcmp.eq.f32.partialorder %v1129_v32, 8.507059e+37 }
 0xc65   :  { %v1065_v57 = vor.u32 1.1754944e-38, %v1064_v53  ;;  %vm1063_vm9 = vcmp.eq.f32.partialorder %v1062_v55, 8.507059e+37 }
 0xc68   :  { %v1959_v36 = vpop.eup %1958 }
 0xc69   :  { %v1121_v14 = vmul.f32 %v1959_v36, %v1119_v40  ;;  %v1961_v37 = vpop.eup %1960  ;;  %vm1126_vm15 = vweird.f32 %v1959_v36 }
 0xc6a   :  { %v1054_v8 = vmul.f32 %v1961_v37, %v1052_v52  ;;  %vm1127_vm2 = vmor %vm1125_vm1, %vm1126_vm15  ;;  %vm1059_vm4 = vweird.f32 %v1961_v37  ;;  %v136_v52 = vadd.f32 %v2530_v41, %v2619_v44  ;;  %v2673_v44 = vld [vmem:[%s2816_s7] ss:$0 sm:$0xff] }
 0xc6b   :  { %v1122_v10 = vsub.f32 1.0, %v1121_v14  ;;  %vm1060_vm8 = vmor %vm1058_vm7, %vm1059_vm4 }
 0xc6c   :  { %v1055_v38 = vsub.f32 1.0, %v1054_v8 }
 0xc6d   :  { %v1123_v43 = vmul.f32 %v1959_v36, %v1122_v10 }
 0xc6e   :  { %v1006_v0 = vpop.permute.xlu1 %1005  ;;  %v1056_v12 = vmul.f32 %v1961_v37, %v1055_v38 }
 0xc6f   :  { %v1008_v1 = vmul.f32 %v1006_v0, %v2630_v63  ;;  %v1124_v9 = vadd.f32 %v1959_v36, %v1123_v43  ;;  %v2058_v0 = vld [vmem:[#allocation4 + $0x18] sm:$0xff] }
 0xc70   :  { %v1057_v21 = vadd.f32 %v1961_v37, %v1056_v12 }
 0xc71   :  { %1010 = vrot.lane.b32.xlu1 %v1008_v1, %s2120_s22  ;;  %v1128_v15 = vsel %vm1127_vm2, %v1959_v36, %v1124_v9  ;;  %v2059_v1 = vld [vmem:[#allocation4 + $0x10] sm:$0xff] }
 0xc72   :  { %v1133_v51 = vsel %vm1130_vm3, %v1132_v20, %v1128_v15  ;;  %v1061_v56 = vsel %vm1060_vm8, %v1961_v37, %v1057_v21 }
 0xc73   :  { %v1066_v59 = vsel %vm1063_vm9, %v1065_v57, %v1061_v56  ;;  %v1136_v2 = vmul.f32 %v1133_v51, %v2552_v4 }
 0xc74   :  { %v1069_v23 = vmul.f32 %v1066_v59, %v2557_v34 }
 0xcb3   :  { %v1139_v50 = vpop.permute.xlu0 %1138 }
 0xcb4   :  { %v1141_v54 = vmul.f32 %v1139_v50, %v1133_v51 }
 0xcb6   :  { %1143 = vrot.lane.b32.xlu0 %v1141_v54, %s2120_s22 }
 0xcb9   :  { %v1072_v22 = vpop.permute.xlu2 %1071 }
 0xcba   :  { %v1074_v16 = vmul.f32 %v1072_v22, %v1066_v59 }
 0xcbc   :  { %1076 = vrot.lane.b32.xlu2 %v1074_v16, %s2120_s22 }
 0xce3   :  { %v1011_v17 = vpop.permute.xlu1 %1010 }
 0xce4   :  { %v2638_v18 = vadd.f32 %v1011_v17, %v1003_v26 }
 0xce6   :  { %1962 = vtanh.f32 %v2638_v18 }
 0xcec   :  { %v1963_v19 = vpop.eup %1962 }
 0xced   :  { %1016 = vrot.lane.b32.xlu1 %v1963_v19, %s2120_s22 }
 0xd16   :  { %v1077_v25 = vpop.permute.xlu2 %1076 }
 0xd17   :  { %v2643_v27 = vadd.f32 %v1077_v25, %v1069_v23 }
 0xd19   :  { %1964 = vtanh.f32 %v2643_v27 }
 0xd1f   :  { %v1965_v28 = vpop.eup %1964 }
 0xd20   :  { %1082 = vrot.lane.b32.xlu2 %v1965_v28, %s2120_s22 }
 0xd28   :  { %v1144_v29 = vpop.permute.xlu0 %1143 }
 0xd29   :  { %v2648_v6 = vadd.f32 %v1144_v29, %v1136_v2 }
 0xd2b   :  { %1966 = vtanh.f32 %v2648_v6 }
 0xd31   :  { %v1967_v42 = vpop.eup %1966 }
 0xd32   :  { %1149 = vrot.lane.b32.xlu0 %v1967_v42, %s2120_s22 }
 0xd5f   :  { %v1017_v45 = vpop.permute.xlu1 %1016 }
 0xd60   :  { %v1019_v34 = vmul.f32 %v1017_v45, %v2630_v63  ;;  %v2057_v63 = vld [vmem:[#allocation4 + $0x20] sm:$0xff] }
 0xd62   :  { %1159 = vrot.lane.b32.xlu1 %v1019_v34, %s2121_s2 }
 0xd7a   :  { %v1083_v13 = vpop.permute.xlu2 %1082 }
 0xd7b   :  { %v1085_v46 = vmul.f32 %v1083_v13, %v1066_v59 }
 0xd7d   :  { %1287 = vrot.lane.b32.xlu0 %v1085_v46, %s2121_s2  ;;  %1223 = vrot.lane.b32.xlu2 %v1085_v46, %s2122_s24 }
 0xda4   :  { %v1150_v4 = vpop.permute.xlu0 %1149 }
 0xda5   :  { %v2656_v31 = vmul.f32 %v1150_v4, %v1133_v51 }
 0xda7   :  { %1290 = vrot.lane.b32.xlu1 %v2656_v31, %s2122_s24 }
 0xdd4   :  { %v1160_v30 = vpop.permute.xlu1 %1159 }
 0xdd5   :  { %1817 = vmatmul.msk.f32.vlgmr.msrb.gmra.mxu1 %vm163_vm5, %v1160_v30 }
 0xdd6   :  { %1647 = vmatpush.msrb.mxu1 %v2054_v48 }
 0xdd7   :  { %v1224_v58 = vpop.permute.xlu2 %1223 }
 0xdd8   :  { %v1226_v61 = vsel %vm163_vm5, %v1160_v30, %v1224_v58  ;;  %1648 = vmatpush.msrb.mxu1 %v2055_v49 }
 0xdd9   :  { %1819 = vmatmul.msk.f32.vlgmr.msrb.gmra.mxu2 %vm293_vm6, %v1226_v61 }
 0xdda   :  { %1649 = vmatpush.msrb.mxu1 %v2056_v62 }
 0xddc   :  { %1650 = vmatpush.msrb.mxu1 %v2057_v63 }
 0xdde   :  { %1651 = vmatpush.msrb.mxu1 %v2058_v0 }
 0xde0   :  { %1652 = vmatpush.msrb.mxu1 %v2059_v1 }
 0xde2   :  { %1653 = vmatpush.msrb.mxu1 %v2060_v5 }
 0xde4   :  { %1654 = vmatpush.msrb.mxu1 %v2061_v3 }
 0xdef   :  { %v1288_v7 = vpop.permute.xlu0 %1287 }
 0xe19   :  { %v1291_v40 = vpop.permute.xlu1 %1290 }
 0xe1a   :  { %v1293_v33 = vsel %vm163_vm5, %v1288_v7, %v1291_v40 }
 0xe1b   :  { %1821 = vmatmul.msk.f32.vlgmr.msra.gmra.mxu1 %vm293_vm6, %v1293_v33 }
 0xe52   :  { %v1180_v36 = vpop.f32.mrf.mxu1 }
 0xe53   :  { %v1183_v14 = vadd.f32 %v1180_v36, %v136_v52 }
 0xe55   :  { %1968 = vtanh.f32 %v1183_v14  ;;  %v1818_v38 = vmul.f32 -1.442695, %v1183_v14 }
 0xe5b   :  { %v1969_v37 = vpop.eup %1968 }
 0xe5c   :  { %1206 = vrot.lane.b32.xlu2 %v1969_v37, %s2120_s22  ;;  %v1247_v10 = vpop.f32.mrf.mxu2 }
 0xe5d   :  { %v1248_v8 = vadd.f32 %v2626_v35, %v1247_v10 }
 0xe5f   :  { %1970 = vtanh.f32 %v1248_v8  ;;  %v1820_v51 = vmul.f32 -1.442695, %v1248_v8 }
 0xe60   :  { %1972 = vpow2.f32 %v1818_v38 }
 0xe65   :  { %v1971_v43 = vpop.eup %1970 }
 0xe66   :  { %1272 = vrot.lane.b32.xlu0 %v1971_v43, %s2120_s22  ;;  %v1973_v9 = vpop.eup %1972 }
 0xe67   :  { %v1187_v11 = vadd.f32 1.0, %v1973_v9 }
 0xe69   :  { %1974 = vrcp.f32 %v1187_v11  ;;  %v1199_v55 = vand.u32 2147483648, %v1187_v11  ;;  %vm1193_vm11 = vweird.f32 %v1187_v11  ;;  %v1197_v56 = vand.u32 2147483647, %v1187_v11 }
 0xe6b   :  { %v1200_v59 = vor.u32 1.1754944e-38, %v1199_v55  ;;  %vm1198_vm12 = vcmp.eq.f32.partialorder %v1197_v56, 8.507059e+37  ;;  %v139_v56 = vadd.f32 %v2530_v41, %v2296_v47 }
 0xe6f   :  { %v1975_v15 = vpop.eup %1974 }
 0xe70   :  { %v1189_v21 = vmul.f32 %v1975_v15, %v1187_v11  ;;  %vm1194_vm10 = vweird.f32 %v1975_v15 }
 0xe71   :  { %vm1195_vm0 = vmor %vm1193_vm11, %vm1194_vm10 }
 0xe72   :  { %v1190_v50 = vsub.f32 1.0, %v1189_v21 }
 0xe74   :  { %v1191_v53 = vmul.f32 %v1975_v15, %v1190_v50 }
 0xe76   :  { %v1192_v54 = vadd.f32 %v1975_v15, %v1191_v53 }
 0xe78   :  { %v1196_v57 = vsel %vm1195_vm0, %v1975_v15, %v1192_v54 }
 0xe79   :  { %v1201_v16 = vsel %vm1198_vm12, %v1200_v59, %v1196_v57 }
 0xe7a   :  { %v1204_v40 = vmul.f32 %v1201_v16, %v2638_v18 }
 0xe98   :  { %v1314_v32 = vpop.f32.mrf.mxu1 }
 0xe99   :  { %v1315_v12 = vadd.f32 %v2673_v44, %v1314_v32 }
 0xe9b   :  { %1976 = vtanh.f32 %v1315_v12  ;;  %v1822_v48 = vmul.f32 -1.442695, %v1315_v12 }
 0xe9c   :  { %1978 = vpow2.f32 %v1820_v51 }
 0xea1   :  { %v1977_v20 = vpop.eup %1976 }
 0xea2   :  { %1339 = vrot.lane.b32.xlu1 %v1977_v20, %s2120_s22  ;;  %v1979_v22 = vpop.eup %1978 }
 0xea3   :  { %v1253_v19 = vadd.f32 1.0, %v1979_v22 }
 0xea5   :  { %1980 = vrcp.f32 %v1253_v19  ;;  %v1265_v42 = vand.u32 2147483648, %v1253_v19  ;;  %vm1259_vm14 = vweird.f32 %v1253_v19  ;;  %v1263_v45 = vand.u32 2147483647, %v1253_v19 }
 0xea6   :  { %1982 = vpow2.f32 %v1822_v48 }
 0xea7   :  { %v1266_v13 = vor.u32 1.1754944e-38, %v1265_v42  ;;  %vm1264_vm1 = vcmp.eq.f32.partialorder %v1263_v45, 8.507059e+37 }
 0xeab   :  { %v1981_v23 = vpop.eup %1980 }
 0xeac   :  { %v1255_v25 = vmul.f32 %v1981_v23, %v1253_v19  ;;  %vm1260_vm13 = vweird.f32 %v1981_v23  ;;  %v1983_v58 = vpop.eup %1982 }
 0xead   :  { %vm1261_vm15 = vmor %vm1259_vm14, %vm1260_vm13  ;;  %v1320_v61 = vadd.f32 1.0, %v1983_v58 }
 0xeae   :  { %v1256_v28 = vsub.f32 1.0, %v1255_v25 }
 0xeaf   :  { %1984 = vrcp.f32 %v1320_v61  ;;  %v1332_v5 = vand.u32 2147483648, %v1320_v61  ;;  %vm1326_vm3 = vweird.f32 %v1320_v61  ;;  %v1330_v3 = vand.u32 2147483647, %v1320_v61 }
 0xeb0   :  { %v1257_v2 = vmul.f32 %v1981_v23, %v1256_v28 }
 0xeb1   :  { %v1333_v33 = vor.u32 1.1754944e-38, %v1332_v5  ;;  %vm1331_vm7 = vcmp.eq.f32.partialorder %v1330_v3, 8.507059e+37 }
 0xeb2   :  { %v1258_v29 = vadd.f32 %v1981_v23, %v1257_v2 }
 0xeb4   :  { %v1262_v34 = vsel %vm1261_vm15, %v1981_v23, %v1258_v29 }
 0xeb5   :  { %v1267_v4 = vsel %vm1264_vm1, %v1266_v13, %v1262_v34  ;;  %v1985_v49 = vpop.eup %1984 }
 0xeb6   :  { %v1207_v26 = vpop.permute.xlu2 %1206  ;;  %v1322_v62 = vmul.f32 %v1985_v49, %v1320_v61  ;;  %vm1327_vm2 = vweird.f32 %v1985_v49  ;;  %v1270_v43 = vmul.f32 %v1267_v4, %v2643_v27 }
 0xeb7   :  { %v1209_v17 = vmul.f32 %v1207_v26, %v1201_v16  ;;  %vm1328_vm4 = vmor %vm1326_vm3, %vm1327_vm2 }
 0xeb8   :  { %v1323_v63 = vsub.f32 1.0, %v1322_v62 }
 0xeb9   :  { %1211 = vrot.lane.b32.xlu2 %v1209_v17, %s2120_s22 }
 0xeba   :  { %v1324_v0 = vmul.f32 %v1985_v49, %v1323_v63 }
 0xebc   :  { %v1325_v1 = vadd.f32 %v1985_v49, %v1324_v0 }
 0xebe   :  { %v1329_v7 = vsel %vm1328_vm4, %v1985_v49, %v1325_v1 }
 0xebf   :  { %v1334_v37 = vsel %vm1331_vm7, %v1333_v33, %v1329_v7 }
 0xec0   :  { %v1337_v12 = vmul.f32 %v1334_v37, %v2648_v6 }
 0xed8   :  { %v1273_v46 = vpop.permute.xlu0 %1272 }
 0xed9   :  { %v1275_v30 = vmul.f32 %v1273_v46, %v1267_v4 }
 0xedb   :  { %1277 = vrot.lane.b32.xlu0 %v1275_v30, %s2120_s22 }
 0xf13   :  { %v1212_v52 = vpop.permute.xlu2 %1211 }
 0xf14   :  { %v2680_v36 = vadd.f32 %v1212_v52, %v1204_v40  ;;  %v1340_v14 = vpop.permute.xlu1 %1339 }
 0xf15   :  { %v1342_v10 = vmul.f32 %v1340_v14, %v1334_v37 }
 0xf16   :  { %1986 = vtanh.f32 %v2680_v36 }
 0xf17   :  { %1344 = vrot.lane.b32.xlu1 %v1342_v10, %s2120_s22 }
 0xf1c   :  { %v1987_v8 = vpop.eup %1986 }
 0xf1d   :  { %1217 = vrot.lane.b32.xlu2 %v1987_v8, %s2120_s22 }
 0xf4d   :  { %v1278_v38 = vpop.permute.xlu0 %1277 }
 0xf4e   :  { %v2686_v9 = vadd.f32 %v1278_v38, %v1270_v43 }
 0xf50   :  { %1988 = vtanh.f32 %v2686_v9 }
 0xf56   :  { %v1989_v18 = vpop.eup %1988 }
 0xf57   :  { %1283 = vrot.lane.b32.xlu0 %v1989_v18, %s2120_s22 }
 0xf77   :  { %v1218_v11 = vpop.permute.xlu2 %1217 }
 0xf78   :  { %v1220_v32 = vmul.f32 %v1218_v11, %v1201_v16 }
 0xf7a   :  { %1360 = vrot.lane.b32.xlu2 %v1220_v32, %s2121_s2 }
 0xf89   :  { %v1345_v15 = vpop.permute.xlu1 %1344 }
 0xf8a   :  { %v2692_v20 = vadd.f32 %v1345_v15, %v1337_v12 }
 0xf8c   :  { %1990 = vtanh.f32 %v2692_v20 }
 0xf92   :  { %v1991_v27 = vpop.eup %1990 }
 0xf93   :  { %1350 = vrot.lane.b32.xlu1 %v1991_v27, %s2120_s22 }
 0xfc9   :  { %v1284_v21 = vpop.permute.xlu0 %1283 }
 0xfca   :  { %v1286_v50 = vmul.f32 %v1284_v21, %v1267_v4 }
 0xfcc   :  { %1488 = vrot.lane.b32.xlu1 %v1286_v50, %s2121_s2  ;;  %1424 = vrot.lane.b32.xlu0 %v1286_v50, %s2122_s24 }
 0xfd4   :  { %v1361_v51 = vpop.permute.xlu2 %1360 }
 0xfd5   :  { %1823 = vmatmul.msk.f32.vlgmr.msrb.gmra.mxu3 %vm163_vm5, %v1361_v51 }
0x1005   :  { %v1351_v53 = vpop.permute.xlu1 %1350 }
0x1006   :  { %v2699_v54 = vmul.f32 %v1351_v53, %v1334_v37 }
0x1008   :  { %1491 = vrot.lane.b32.xlu2 %v2699_v54, %s2122_s24 }
0x103e   :  { %v1425_v6 = vpop.permute.xlu0 %1424  ;;  %v1489_v16 = vpop.permute.xlu1 %1488 }
0x103f   :  { %v1427_v55 = vsel %vm163_vm5, %v1361_v51, %v1425_v6 }
0x1040   :  { %1825 = vmatmul.msk.f32.vlgmr.msra.gmra.mxu0 %vm293_vm6, %v1427_v55 }
0x1058   :  { %v1381_v57 = vpop.f32.mrf.mxu3 }
0x1059   :  { %v1384_v59 = vadd.f32 %v1381_v57, %v139_v56 }
0x105b   :  { %1992 = vtanh.f32 %v1384_v59  ;;  %v1824_v19 = vmul.f32 -1.442695, %v1384_v59 }
0x105d   :  { %1994 = vpow2.f32 %v1824_v19 }
0x1061   :  { %v1993_v22 = vpop.eup %1992 }
0x1062   :  { %1407 = vrot.lane.b32.xlu0 %v1993_v22, %s2120_s22  ;;  %v1492_v26 = vpop.permute.xlu2 %1491 }
0x1063   :  { %v1494_v17 = vsel %vm163_vm5, %v1489_v16, %v1492_v26  ;;  %v1995_v23 = vpop.eup %1994 }
0x1064   :  { %1827 = vmatmul.msk.f32.vlgmr.msra.gmra.mxu2 %vm293_vm6, %v1494_v17  ;;  %v1388_v25 = vadd.f32 1.0, %v1995_v23 }
0x1066   :  { %1996 = vrcp.f32 %v1388_v25  ;;  %v1400_v13 = vand.u32 2147483648, %v1388_v25  ;;  %vm1394_vm9 = vweird.f32 %v1388_v25  ;;  %v1398_v46 = vand.u32 2147483647, %v1388_v25 }
0x1068   :  { %v1401_v30 = vor.u32 1.1754944e-38, %v1400_v13  ;;  %vm1399_vm11 = vcmp.eq.f32.partialorder %v1398_v46, 8.507059e+37 }
0x106c   :  { %v1997_v2 = vpop.eup %1996 }
0x106d   :  { %v1390_v41 = vmul.f32 %v1997_v2, %v1388_v25  ;;  %vm1395_vm8 = vweird.f32 %v1997_v2 }
0x106e   :  { %vm1396_vm10 = vmor %vm1394_vm9, %vm1395_vm8 }
0x106f   :  { %v1391_v29 = vsub.f32 1.0, %v1390_v41 }
0x1071   :  { %v1392_v45 = vmul.f32 %v1997_v2, %v1391_v29 }
0x1073   :  { %v1393_v34 = vadd.f32 %v1997_v2, %v1392_v45 }
0x1075   :  { %v1397_v4 = vsel %vm1396_vm10, %v1997_v2, %v1393_v34 }
0x1076   :  { %v2712_v58 = vsel %vm1399_vm11, %v1401_v30, %v1397_v4 }
0x1077   :  { %v1405_v55 = vmul.f32 %v2712_v58, %v2680_v36 }
0x10bd   :  { %v1448_v28 = vpop.f32.mrf.mxu0 }
0x10be   :  { %v1449_v47 = vadd.f32 %v2626_v35, %v1448_v28 }
0x10c0   :  { %1998 = vtanh.f32 %v1449_v47  ;;  %v1826_v0 = vmul.f32 -1.442695, %v1449_v47 }
0x10c6   :  { %v1999_v42 = vpop.eup %1998 }
0x10c7   :  { %1473 = vrot.lane.b32.xlu1 %v1999_v42, %s2120_s22 }
0x10d4   :  { %v1408_v48 = vpop.permute.xlu0 %1407 }
0x10d5   :  { %v1410_v61 = vmul.f32 %v1408_v48, %v2712_v58 }
0x10d7   :  { %1412 = vrot.lane.b32.xlu0 %v1410_v61, %s2120_s22 }
0x10e7   :  { %v1515_v49 = vpop.f32.mrf.mxu2 }
0x10e8   :  { %v1516_v62 = vadd.f32 %v2673_v44, %v1515_v49 }
0x10ea   :  { %2000 = vtanh.f32 %v1516_v62  ;;  %v1828_v3 = vmul.f32 -1.442695, %v1516_v62 }
0x10eb   :  { %2002 = vpow2.f32 %v1826_v0 }
0x10f0   :  { %v2001_v63 = vpop.eup %2000 }
0x10f1   :  { %1540 = vrot.lane.b32.xlu2 %v2001_v63, %s2120_s22  ;;  %v2003_v1 = vpop.eup %2002 }
0x10f2   :  { %v1454_v5 = vadd.f32 1.0, %v2003_v1 }
0x10f4   :  { %2004 = vrcp.f32 %v1454_v5  ;;  %v1466_v8 = vand.u32 2147483648, %v1454_v5  ;;  %vm1460_vm12 = vweird.f32 %v1454_v5  ;;  %v1464_v43 = vand.u32 2147483647, %v1454_v5 }
0x10f5   :  { %2006 = vpow2.f32 %v1828_v3 }
0x10f6   :  { %v1467_v11 = vor.u32 1.1754944e-38, %v1466_v8  ;;  %vm1465_vm14 = vcmp.eq.f32.partialorder %v1464_v43, 8.507059e+37 }
0x10fa   :  { %v2005_v7 = vpop.eup %2004 }
0x10fb   :  { %v1456_v40 = vmul.f32 %v2005_v7, %v1454_v5  ;;  %v2007_v33 = vpop.eup %2006  ;;  %vm1461_vm0 = vweird.f32 %v2005_v7 }
0x10fc   :  { %v1521_v14 = vadd.f32 1.0, %v2007_v33  ;;  %vm1462_vm13 = vmor %vm1460_vm12, %vm1461_vm0 }
0x10fd   :  { %v1457_v52 = vsub.f32 1.0, %v1456_v40 }
0x10fe   :  { %2008 = vrcp.f32 %v1521_v14  ;;  %v1533_v53 = vand.u32 2147483648, %v1521_v14  ;;  %vm1527_vm1 = vweird.f32 %v1521_v14  ;;  %v1531_v6 = vand.u32 2147483647, %v1521_v14 }
0x10ff   :  { %v1458_v37 = vmul.f32 %v2005_v7, %v1457_v52 }
0x1100   :  { %v1534_v59 = vor.u32 1.1754944e-38, %v1533_v53  ;;  %vm1532_vm3 = vcmp.eq.f32.partialorder %v1531_v6, 8.507059e+37 }
0x1101   :  { %v1459_v10 = vadd.f32 %v2005_v7, %v1458_v37 }
0x1103   :  { %v1463_v18 = vsel %vm1462_vm13, %v2005_v7, %v1459_v10 }
0x1104   :  { %v2009_v38 = vpop.eup %2008  ;;  %v1468_v15 = vsel %vm1465_vm14, %v1467_v11, %v1463_v18 }
0x1105   :  { %v1523_v32 = vmul.f32 %v2009_v38, %v1521_v14  ;;  %vm1528_vm15 = vweird.f32 %v2009_v38  ;;  %v1471_v36 = vmul.f32 %v1468_v15, %v2686_v9 }
0x1106   :  { %vm1529_vm2 = vmor %vm1527_vm1, %vm1528_vm15 }
0x1107   :  { %v1524_v21 = vsub.f32 1.0, %v1523_v32 }
0x1109   :  { %v1525_v50 = vmul.f32 %v2009_v38, %v1524_v21 }
0x110b   :  { %v1526_v51 = vadd.f32 %v2009_v38, %v1525_v50 }
0x110d   :  { %v1530_v56 = vsel %vm1529_vm2, %v2009_v38, %v1526_v51 }
0x110e   :  { %v1535_v26 = vsel %vm1532_vm3, %v1534_v59, %v1530_v56 }
0x110f   :  { %v1538_v23 = vmul.f32 %v1535_v26, %v2692_v20 }
0x1139   :  { %v1474_v12 = vpop.permute.xlu1 %1473 }
0x113a   :  { %v1476_v27 = vmul.f32 %v1474_v12, %v1468_v15 }
0x113c   :  { %1478 = vrot.lane.b32.xlu1 %v1476_v27, %s2120_s22 }
0x1149   :  { %v1413_v57 = vpop.permute.xlu0 %1412 }
0x114a   :  { %v1415_v22 = vadd.f32 %v1413_v57, %v1405_v55 }
0x114b   :  { %v1541_v16 = vpop.permute.xlu2 %1540 }
0x114c   :  { %2010 = vtanh.f32 %v1415_v22  ;;  %v1543_v17 = vmul.f32 %v1541_v16, %v1535_v26 }
0x114e   :  { %1545 = vrot.lane.b32.xlu2 %v1543_v17, %s2120_s22 }
0x1152   :  { %v2011_v19 = vpop.eup %2010 }
0x1153   :  { %1418 = vrot.lane.b32.xlu0 %v2011_v19, %s2120_s22 }
0x11a8   :  { %v1546_v25 = vpop.permute.xlu2 %1545 }
0x11a9   :  { %v2724_v28 = vadd.f32 %v1546_v25, %v1538_v23 }
0x11ab   :  { %2012 = vtanh.f32 %v2724_v28 }
0x11ae   :  { %v1479_v2 = vpop.permute.xlu1 %1478 }
0x11af   :  { %v2728_v47 = vadd.f32 %v1479_v2, %v1471_v36 }
0x11b1   :  { %v2013_v41 = vpop.eup %2012  ;;  %2014 = vtanh.f32 %v2728_v47 }
0x11b2   :  { %1551 = vrot.lane.b32.xlu2 %v2013_v41, %s2120_s22 }
0x11b7   :  { %v2015_v29 = vpop.eup %2014 }
0x11b8   :  { %1484 = vrot.lane.b32.xlu1 %v2015_v29, %s2120_s22 }
0x11c5   :  { %v1419_v42 = vpop.permute.xlu0 %1418 }
0x11c6   :  { %v1421_v20 = vmul.f32 %v1419_v42, %v2712_v58 }
0x11c8   :  { %1561 = vrot.lane.b32.xlu0 %v1421_v20, %s2121_s2 }
0x120c   :  { %v1552_v45 = vpop.permute.xlu2 %1551 }
0x120d   :  { %v2735_v34 = vmul.f32 %v1552_v45, %v1535_v26 }
0x120f   :  { %1632 = vrot.lane.b32.xlu0 %v2735_v34, %s2122_s24 }
0x122a   :  { %v1485_v9 = vpop.permute.xlu1 %1484 }
0x122b   :  { %v1487_v13 = vmul.f32 %v1485_v9, %v1468_v15 }
0x122d   :  { %1565 = vrot.lane.b32.xlu1 %v1487_v13, %s2122_s24  ;;  %1629 = vrot.lane.b32.xlu2 %v1487_v13, %s2121_s2 }
0x123a   :  { %v1562_v46 = vpop.permute.xlu0 %1561 }
0x1281   :  { %v1633_v4 = vpop.permute.xlu0 %1632 }
0x1287   :  { %v1630_v30 = vpop.permute.xlu2 %1629 }
0x1288   :  { %v1635_v48 = vsel %vm163_vm5, %v1630_v30, %v1633_v4 }
0x1289   :  { %1831 = vmatmul.msk.f32.vlgmr.msrb.gmra.mxu1 %vm293_vm6, %v1635_v48 }
0x129f   :  { %v1566_v58 = vpop.permute.xlu1 %1565 }
0x12a0   :  { %v1568_v61 = vsel %vm163_vm5, %v1562_v46, %v1566_v58 }
0x12a1   :  { %1829 = vmatmul.msk.f32.vlgmr.msra.gmra.mxu3 %vm293_vm6, %v1568_v61 }
0x1306   :  { %v1656_v49 = vpop.f32.mrf.mxu1 }
0x1307   :  { %v1657_v62 = vadd.f32 %v2673_v44, %v1656_v49 }
0x1309   :  { %2016 = vtanh.f32 %v1657_v62  ;;  %v1832_v3 = vmul.f32 -1.442695, %v1657_v62 }
0x130f   :  { %v2017_v63 = vpop.eup %2016 }
0x1310   :  { %1681 = vrot.lane.b32.xlu2 %v2017_v63, %s2120_s22 }
0x1324   :  { %v1589_v0 = vpop.f32.mrf.mxu3 }
0x1325   :  { %v1590_v1 = vadd.f32 %v2626_v35, %v1589_v0 }
0x1327   :  { %2018 = vtanh.f32 %v1590_v1  ;;  %v1830_v12 = vmul.f32 -1.442695, %v1590_v1 }
0x1328   :  { %2020 = vpow2.f32 %v1832_v3 }
0x132d   :  { %v2019_v5 = vpop.eup %2018 }
0x132e   :  { %1614 = vrot.lane.b32.xlu1 %v2019_v5, %s2120_s22  ;;  %v2021_v7 = vpop.eup %2020 }
0x132f   :  { %v1662_v40 = vadd.f32 1.0, %v2021_v7 }
0x1331   :  { %2022 = vrcp.f32 %v1662_v40  ;;  %v1674_v8 = vand.u32 2147483648, %v1662_v40  ;;  %vm1668_vm7 = vweird.f32 %v1662_v40  ;;  %v1672_v43 = vand.u32 2147483647, %v1662_v40 }
0x1332   :  { %2024 = vpow2.f32 %v1830_v12 }
0x1333   :  { %v1675_v38 = vor.u32 1.1754944e-38, %v1674_v8  ;;  %vm1673_vm9 = vcmp.eq.f32.partialorder %v1672_v43, 8.507059e+37 }
0x1337   :  { %v2023_v33 = vpop.eup %2022 }
0x1338   :  { %v1664_v52 = vmul.f32 %v2023_v33, %v1662_v40  ;;  %vm1669_vm4 = vweird.f32 %v2023_v33  ;;  %v2025_v15 = vpop.eup %2024 }
0x1339   :  { %vm1670_vm8 = vmor %vm1668_vm7, %vm1669_vm4  ;;  %v1595_v27 = vadd.f32 1.0, %v2025_v15 }
0x133a   :  { %v1665_v14 = vsub.f32 1.0, %v1664_v52 }
0x133b   :  { %2026 = vrcp.f32 %v1595_v27  ;;  %v1607_v55 = vand.u32 2147483648, %v1595_v27  ;;  %vm1601_vm11 = vweird.f32 %v1595_v27  ;;  %v1605_v56 = vand.u32 2147483647, %v1595_v27 }
0x133c   :  { %v1666_v37 = vmul.f32 %v2023_v33, %v1665_v14 }
0x133d   :  { %v1608_v59 = vor.u32 1.1754944e-38, %v1607_v55  ;;  %vm1606_vm12 = vcmp.eq.f32.partialorder %v1605_v56, 8.507059e+37 }
0x133e   :  { %v1667_v10 = vadd.f32 %v2023_v33, %v1666_v37 }
0x1340   :  { %v1671_v35 = vsel %vm1670_vm8, %v2023_v33, %v1667_v10 }
0x1341   :  { %v1676_v11 = vsel %vm1673_vm9, %v1675_v38, %v1671_v35  ;;  %v2027_v21 = vpop.eup %2026 }
0x1342   :  { %v1597_v50 = vmul.f32 %v2027_v21, %v1595_v27  ;;  %vm1602_vm10 = vweird.f32 %v2027_v21  ;;  %v1679_v17 = vmul.f32 %v1676_v11, %v2724_v28 }
0x1343   :  { %vm1603_vm0 = vmor %vm1601_vm11, %vm1602_vm10 }
0x1344   :  { %v1598_v51 = vsub.f32 1.0, %v1597_v50 }
0x1346   :  { %v1599_v53 = vmul.f32 %v2027_v21, %v1598_v51 }
0x1348   :  { %v1600_v6 = vadd.f32 %v2027_v21, %v1599_v53 }
0x134a   :  { %v1604_v57 = vsel %vm1603_vm0, %v2027_v21, %v1600_v6 }
0x134b   :  { %v1609_v16 = vsel %vm1606_vm12, %v1608_v59, %v1604_v57 }
0x134c   :  { %v1612_v36 = vmul.f32 %v1609_v16, %v2728_v47 }
0x136a   :  { %v1682_v18 = vpop.permute.xlu2 %1681 }
0x136b   :  { %v1684_v32 = vmul.f32 %v1682_v18, %v1676_v11 }
0x136d   :  { %1686 = vrot.lane.b32.xlu1 %v1684_v32, %s2120_s22 }
0x13a0   :  { %v1615_v22 = vpop.permute.xlu1 %1614 }
0x13a1   :  { %v1617_v26 = vmul.f32 %v1615_v22, %v1609_v16 }
0x13a3   :  { %1619 = vrot.lane.b32.xlu0 %v1617_v26, %s2120_s22 }
0x13df   :  { %v1687_v19 = vpop.permute.xlu1 %1686 }
0x13e0   :  { %v1689_v23 = vadd.f32 %v1687_v19, %v1679_v17 }
0x13e2   :  { %2028 = vtanh.f32 %v1689_v23 }
0x13e8   :  { %v2029_v25 = vpop.eup %2028 }
0x13e9   :  { %1692 = vrot.lane.b32.xlu0 %v2029_v25, %s2120_s22 }
0x1415   :  { %v1620_v2 = vpop.permute.xlu0 %1619 }
0x1416   :  { %v1622_v41 = vadd.f32 %v1620_v2, %v1612_v36 }
0x1418   :  { %2030 = vtanh.f32 %v1622_v41 }
0x141e   :  { %v2031_v29 = vpop.eup %2030 }
0x141f   :  { %1625 = vrot.lane.b32.xlu2 %v2031_v29, %s2120_s22 }
0x145b   :  { %v1693_v42 = vpop.permute.xlu0 %1692 }
0x145c   :  { %v1695_v20 = vmul.f32 %v1693_v42, %v1676_v11 }
0x145e   :  { %1705 = vrot.lane.b32.xlu2 %v1695_v20, %s2122_s24 }
0x1479   :  { %v1626_v45 = vpop.permute.xlu2 %1625 }
0x147a   :  { %v1628_v28 = vmul.f32 %v1626_v45, %v1609_v16 }
0x147c   :  { %1702 = vrot.lane.b32.xlu1 %v1628_v28, %s2121_s2 }
0x14b8   :  { %v1706_v9 = vpop.permute.xlu2 %1705 }
0x14ee   :  { %v1703_v13 = vpop.permute.xlu1 %1702 }
0x14ef   :  { %v1708_v46 = vsel %vm163_vm5, %v1703_v13, %v1706_v9 }
0x14f0   :  { %1833 = vmatmul.msk.f32.vlgmr.msrb.gmra.mxu0 %vm293_vm6, %v1708_v46 }
0x156d   :  { %v1729_v47 = vpop.f32.mrf.mxu0 }
0x156e   :  { %v1730_v4 = vadd.f32 %v2673_v44, %v1729_v47 }
0x1570   :  { %2032 = vtanh.f32 %v1730_v4  ;;  %v1834_v48 = vmul.f32 -1.442695, %v1730_v4 }
0x1572   :  { %2034 = vpow2.f32 %v1834_v48 }
0x1576   :  { %v2033_v30 = vpop.eup %2032 }
0x1577   :  { %1754 = vrot.lane.b32.xlu0 %v2033_v30, %s2120_s22 }
0x1578   :  { %v2035_v58 = vpop.eup %2034 }
0x1579   :  { %v1735_v61 = vadd.f32 1.0, %v2035_v58 }
0x157b   :  { %2036 = vrcp.f32 %v1735_v61  ;;  %v1747_v1 = vand.u32 2147483648, %v1735_v61  ;;  %vm1741_vm13 = vweird.f32 %v1735_v61  ;;  %v1745_v5 = vand.u32 2147483647, %v1735_v61 }
0x157d   :  { %v1748_v3 = vor.u32 1.1754944e-38, %v1747_v1  ;;  %vm1746_vm15 = vcmp.eq.f32.partialorder %v1745_v5, 8.507059e+37 }
0x157f   :  { %551 = vrot.lane.b32.xlu0 %v2429_v60, %s2121_s2 }
0x1581   :  { %v2037_v49 = vpop.eup %2036 }
0x1582   :  { %v1737_v62 = vmul.f32 %v2037_v49, %v1735_v61  ;;  %vm1742_vm6 = vweird.f32 %v2037_v49 }
0x1583   :  { %vm1743_vm14 = vmor %vm1741_vm13, %vm1742_vm6 }
0x1584   :  { %v1738_v44 = vsub.f32 1.0, %v1737_v62 }
0x1586   :  { %v1739_v63 = vmul.f32 %v2037_v49, %v1738_v44 }
0x1587   :  { %1154 = vrot.lane.b32.xlu0 %v2656_v31, %s2121_s2 }
0x1588   :  { %v1740_v0 = vadd.f32 %v2037_v49, %v1739_v63 }
0x158a   :  { %v1744_v60 = vsel %vm1743_vm14, %v2037_v49, %v1740_v0 }
0x158b   :  { %v1749_v7 = vsel %vm1746_vm15, %v1748_v3, %v1744_v60 }
0x158c   :  { %v1752_v37 = vmul.f32 %v1749_v7, %v1689_v23 }
0x158f   :  { %1697 = vrot.lane.b32.xlu0 %v1695_v20, %s2121_s2 }
0x15e9   :  { %v1755_v31 = vpop.permute.xlu0 %1754 }
0x15ea   :  { %v1757_v40 = vmul.f32 %v1755_v31, %v1749_v7 }
0x15ec   :  { %1759 = vrot.lane.b32.xlu1 %v1757_v40, %s2120_s22 }
0x15f1   :  { %v552_v33 = vpop.permute.xlu0 %551 }
0x15f2   :  { %554 = vst.msk [vmem:[%s2817_s8] sm:$0xff] %vm163_vm5, %v552_v33 }
0x15f4   :  { %752 = vrot.lane.b32.xlu1 %v2504_v24, %s2121_s2 }
0x15f9   :  { %v1155_v52 = vpop.permute.xlu0 %1154 }
0x15fa   :  { %1157 = vst.msk [vmem:[%s2817_s8 + $0x18] sm:$0xff] %vm163_vm5, %v1155_v52 }
0x15fc   :  { %1355 = vrot.lane.b32.xlu1 %v2699_v54, %s2121_s2 }
0x1601   :  { %v1698_v14 = vpop.permute.xlu0 %1697 }
0x1602   :  { %1700 = vst.msk [vmem:[%s2817_s8 + $0x30] sm:$0xff] %vm163_vm5, %v1698_v14 }
0x165e   :  { %v1760_v10 = vpop.permute.xlu1 %1759 }
0x165f   :  { %v1762_v8 = vadd.f32 %v1760_v10, %v1752_v37 }
0x1661   :  { %2038 = vtanh.f32 %v1762_v8 }
0x1666   :  { %v753_v24 = vpop.permute.xlu1 %752 }
0x1667   :  { %v2039_v43 = vpop.eup %2038  ;;  %755 = vst.msk [vmem:[%s2817_s8 + $0x8] sm:$0xff] %vm163_vm5, %v753_v24 }
0x1668   :  { %1765 = vrot.lane.b32.xlu2 %v2039_v43, %s2120_s22 }
0x166e   :  { %v1356_v54 = vpop.permute.xlu1 %1355 }
0x166f   :  { %1358 = vst.msk [vmem:[%s2817_s8 + $0x20] sm:$0xff] %vm163_vm5, %v1356_v54 }
0x1670   :  { %953 = vrot.lane.b32.xlu2 %v2563_v39, %s2121_s2 }
0x1678   :  { %1556 = vrot.lane.b32.xlu2 %v2735_v34, %s2121_s2 }
0x16c2   :  { %v1766_v35 = vpop.permute.xlu2 %1765 }
0x16c3   :  { %v1768_v38 = vmul.f32 %v1766_v35, %v1749_v7 }
0x16c5   :  { %1770 = vrot.lane.b32.xlu1 %v1768_v38, %s2121_s2 }
0x16ca   :  { %v954_v18 = vpop.permute.xlu2 %953 }
0x16cb   :  { %956 = vst.msk [vmem:[%s2817_s8 + $0x10] sm:$0xff] %vm163_vm5, %v954_v18 }
0x16d2   :  { %v1557_v11 = vpop.permute.xlu2 %1556 }
0x16d3   :  { %1559 = vst.msk [vmem:[%s2817_s8 + $0x28] sm:$0xff] %vm163_vm5, %v1557_v11 }
0x1737   :  { %v1771_v39 = vpop.permute.xlu1 %1770 }
0x1738   :  { %1773 = vst.msk [vmem:[%s2817_s8 + $0x38] sm:$0xff] %vm163_vm5, %v1771_v39 }
0x1739   :  { %1778 = vsyncpa [#allocation3], 1 }
0x173a   :  { %1779 = vsyncpa [#allocation5], 1 }

</bundles_post_ra>
